<compile_context>
chip_gen: v6e
topology: v6e:2x2x1
jax: 0.10.0
libtpu: 0.0.40
codegen_flags: <defaults>
</compile_context>

<pallas_src>
import functools

import jax
import jax.numpy as jnp
from jax.experimental import pallas as pl
from jax.experimental.pallas import tpu as pltpu


def _round_up(x, m):
    return (x + m - 1) // m * m


# --------------------------------------------------------------------------
# Stage 1: zf branch, once per batch element.
#   zft_T = (support(zf))^T  computed natively as Ws @ zf_cm  -> (C_pad, Nz_pad)
#   zfg   = relu(g(zf))      computed as zf_tok @ Wg          -> (Nz_pad, C_pad)
# --------------------------------------------------------------------------
def _zf_branch_kernel(zf_cm_ref, zf_tok_ref, ws_ref, bs_col_ref, wg_ref, bg_ref,
                      zft_t_ref, zfg_ref):
    f32 = jnp.float32
    # support conv in channel-major layout -> already-transposed zf_trans.
    zft_t = jnp.dot(ws_ref[...], zf_cm_ref[0],
                    preferred_element_type=f32) + bs_col_ref[...]
    # g conv (+ folded BN) + ReLU in token layout.
    zfg = jnp.maximum(
        jnp.dot(zf_tok_ref[0], wg_ref[...],
                preferred_element_type=f32) + bg_ref[...], 0.0)
    zft_t_ref[0] = zft_t.astype(jnp.bfloat16)
    zfg_ref[0] = zfg.astype(jnp.bfloat16)


# --------------------------------------------------------------------------
# Stage 2: attention over xf tiles (zf-side results are plain inputs).
# --------------------------------------------------------------------------
def _gau_kernel(xf_ref, zft_ref, zfg_ref, wqg_ref, bqg_ref,
                wfi_e_ref, wfi_x_ref, bfi_ref, o_ref, *, nz_real):
    f32 = jnp.float32
    bf16 = jnp.bfloat16
    c_pad = wqg_ref.shape[0]

    xf = xf_ref[0]                              # (nx_tile, C_pad) bf16

    # Fused [query | g] conv: one MXU matmul with N = 2*C_pad, then slice at
    # the 128-aligned lane boundary.
    xg = jnp.dot(xf, wqg_ref[...], preferred_element_type=f32) + bqg_ref[...]
    xf_trans = xg[:, :c_pad]
    xf_g = jnp.maximum(xg[:, c_pad:], 0.0)

    # Similarity (nx_tile, Nz_pad): natural-layout matmul, no transposed RHS.
    sim = jnp.dot(xf_trans.astype(bf16), zft_ref[0], preferred_element_type=f32)

    # Mask lane-padding columns of Nz before the softmax.
    if nz_real < sim.shape[-1]:
        col = jax.lax.broadcasted_iota(jnp.int32, (1, sim.shape[-1]), 1)
        sim = sim + jnp.where(col < nz_real, 0.0, -1e30)

    # Stabilized softmax over Nz in f32; denominator via EUP reciprocal.
    sim = sim - jnp.max(sim, axis=-1, keepdims=True)
    p = jnp.exp(sim)
    p = p * pl.reciprocal(jnp.sum(p, axis=-1, keepdims=True), approx=True)

    # embedding: (nx_tile, Nz_pad) @ (Nz_pad, C_pad)
    emb = jnp.dot(p.astype(bf16), zfg_ref[0], preferred_element_type=f32)

    # fi head: two accumulating matmuls instead of concat + one matmul.
    out = (jnp.dot(emb.astype(bf16), wfi_e_ref[...], preferred_element_type=f32)
           + jnp.dot(xf_g.astype(bf16), wfi_x_ref[...], preferred_element_type=f32)
           + bfi_ref[...])
    o_ref[0] = jnp.maximum(out, 0.0).astype(o_ref.dtype)


def _fold_bn(w_t, b, gamma, beta, mean, var, eps=1e-5):
    """Fold eval-mode BatchNorm into a 1x1 conv. w_t is (Cin, Cout)."""
    scale = gamma / jnp.sqrt(var + eps)                 # (Cout,)
    return w_t * scale[None, :], (b - mean) * scale + beta


def _pad2(w, rows, cols):
    return jnp.pad(w, ((0, rows - w.shape[0]), (0, cols - w.shape[1])))


def _pad1(b, n):
    return jnp.pad(b, (0, n - b.shape[0]))


@jax.jit
def graph_attention_union(zf, xf, params):
    """zf: (B, C, Hz, Wz), xf: (B, C, Hx, Wx) in NCHW (float32). Returns NCHW."""
    B, C, Hz, Wz = zf.shape
    _, _, Hx, Wx = xf.shape
    Nz, Nx = Hz * Wz, Hx * Wx
    Cout = params["fi_b"].shape[0]
    bf16 = jnp.bfloat16

    # Lane-aligned (128) padding for C / Cout / Nz; sublane-aligned (8) for Nx.
    C_pad = _round_up(C, 128)
    Cout_pad = _round_up(Cout, 128)
    Nz_pad = _round_up(Nz, 128)

    # Nx tiling: one tile per batch element by default (no redundant grid
    # steps on single-TC v5e/v6e).  Only when B == 1 and Nx is large, split
    # into exactly 2 equal tiles so v7x's second TensorCore gets work.
    if B == 1 and Nx > 512:
        Nx_pad = _round_up(Nx, 16)
        nx_tile = Nx_pad // 2
    else:
        Nx_pad = _round_up(Nx, 8)
        nx_tile = Nx_pad
    n_tiles = Nx_pad // nx_tile

    # Input prep: each line is one fused XLA pass (transpose/reshape+pad+cast).
    zf_cm = jnp.pad(zf.reshape(B, C, Nz),
                    ((0, 0), (0, C_pad - C), (0, Nz_pad - Nz))).astype(bf16)
    zf_tok = jnp.pad(jnp.transpose(zf, (0, 2, 3, 1)).reshape(B, Nz, C),
                     ((0, 0), (0, Nz_pad - Nz), (0, C_pad - C))).astype(bf16)
    xf_tok = jnp.pad(jnp.transpose(xf, (0, 2, 3, 1)).reshape(B, Nx, C),
                     ((0, 0), (0, Nx_pad - Nx), (0, C_pad - C))).astype(bf16)

    # ---- weight prep (BN folded in eval mode, padded, bf16 for the MXU) ----
    # g conv + folded BN (shared by zf and xf branches).
    wg_t, bg = _fold_bn(params["g_w"].T, params["g_b"],
                        params["g_bn_gamma"], params["g_bn_beta"],
                        params["g_bn_mean"], params["g_bn_var"])
    wg_t_pad = _pad2(wg_t, C_pad, C_pad).astype(bf16)
    bg_row = _pad1(bg, C_pad)[None, :]                                # (1, C_pad)

    # support conv kept in (Cout, Cin) orientation for the channel-major matmul.
    ws_cm = _pad2(params["support_w"], C_pad, C_pad).astype(bf16)     # (C_pad, C_pad)
    bs_col = _pad1(params["support_b"], C_pad)[:, None]               # (C_pad, 1)

    # fused [query | g] weight for the xf side.
    wq_t_pad = _pad2(params["query_w"].T, C_pad, C_pad)
    wqg = jnp.concatenate([wq_t_pad, _pad2(wg_t, C_pad, C_pad)],
                          axis=1).astype(bf16)                        # (C_pad, 2*C_pad)
    bqg = jnp.concatenate([_pad1(params["query_b"], C_pad),
                           _pad1(bg, C_pad)])[None, :]                # (1, 2*C_pad)

    # fi conv + folded BN, split at the embedding / xf_g channel boundary.
    wfi_t, bfi = _fold_bn(params["fi_w"].T, params["fi_b"],
                          params["fi_bn_gamma"], params["fi_bn_beta"],
                          params["fi_bn_mean"], params["fi_bn_var"])
    wfi_e = _pad2(wfi_t[:C, :], C_pad, Cout_pad).astype(bf16)         # embedding rows
    wfi_x = _pad2(wfi_t[C:, :], C_pad, Cout_pad).astype(bf16)         # xf_g rows
    bfi = _pad1(bfi, Cout_pad)[None, :]

    # ---- stage 1: zf branch, once per batch element ----
    zft_T, zfg = pl.pallas_call(
        _zf_branch_kernel,
        out_shape=(jax.ShapeDtypeStruct((B, C_pad, Nz_pad), bf16),
                   jax.ShapeDtypeStruct((B, Nz_pad, C_pad), bf16)),
        grid_spec=pltpu.PrefetchScalarGridSpec(
            num_scalar_prefetch=0,
            grid=(B,),
            in_specs=[
                pl.BlockSpec((1, C_pad, Nz_pad), lambda b: (b, 0, 0)),   # zf channel-major
                pl.BlockSpec((1, Nz_pad, C_pad), lambda b: (b, 0, 0)),   # zf tokens
                pl.BlockSpec((C_pad, C_pad), lambda b: (0, 0)),          # support w
                pl.BlockSpec((C_pad, 1), lambda b: (0, 0)),              # support b (col)
                pl.BlockSpec((C_pad, C_pad), lambda b: (0, 0)),          # g w (BN folded)
                pl.BlockSpec((1, C_pad), lambda b: (0, 0)),              # g b
            ],
            out_specs=[pl.BlockSpec((1, C_pad, Nz_pad), lambda b: (b, 0, 0)),
                       pl.BlockSpec((1, Nz_pad, C_pad), lambda b: (b, 0, 0))]),
        compiler_params=pltpu.CompilerParams(dimension_semantics=("parallel",)),
    )(zf_cm, zf_tok, ws_cm, bs_col, wg_t_pad, bg_row)

    # ---- stage 2: attention over xf tiles ----
    const2d = lambda shape: pl.BlockSpec(shape, lambda b, i: (0, 0))

    out_flat = pl.pallas_call(
        functools.partial(_gau_kernel, nz_real=Nz),
        out_shape=jax.ShapeDtypeStruct((B, Nx_pad, Cout_pad), jnp.float32),
        grid_spec=pltpu.PrefetchScalarGridSpec(
            num_scalar_prefetch=0,
            grid=(B, n_tiles),
            in_specs=[
                pl.BlockSpec((1, nx_tile, C_pad), lambda b, i: (b, i, 0)),   # xf tokens
                pl.BlockSpec((1, C_pad, Nz_pad), lambda b, i: (b, 0, 0)),    # zf_trans^T
                pl.BlockSpec((1, Nz_pad, C_pad), lambda b, i: (b, 0, 0)),    # zf_g
                const2d((C_pad, 2 * C_pad)), const2d((1, 2 * C_pad)),        # [query|g]
                const2d((C_pad, Cout_pad)),                                  # fi (emb rows)
                const2d((C_pad, Cout_pad)),                                  # fi (xf_g rows)
                const2d((1, Cout_pad)),                                      # fi bias
            ],
            out_specs=pl.BlockSpec((1, nx_tile, Cout_pad), lambda b, i: (b, i, 0)),
        ),
        # zf work is hoisted, so both grid axes are fully independent.
        compiler_params=pltpu.CompilerParams(
            dimension_semantics=("parallel", "parallel")),
    )(xf_tok, zft_T, zfg, wqg, bqg, wfi_e, wfi_x, bfi)

    # Strip padding; (B, Nx, Cout) -> NCHW to match the PyTorch module contract.
    out = out_flat[:, :Nx, :Cout]
    return jnp.transpose(out, (0, 2, 1)).reshape(B, Cout, Hx, Wx)


def _reference(zf, xf, params):
    """Pure-JAX f32 reference mirroring the PyTorch forward (eval-mode BN)."""
    B, C, Hz, Wz = zf.shape
    _, _, Hx, Wx = xf.shape
    eps = 1e-5

    def conv1x1(x, w, b):  # x: (B,C,H,W), w: (Cout,Cin)
        return jnp.einsum("oc,bchw->bohw", w, x) + b[None, :, None, None]

    def bn(x, g, bta, m, v):
        return g[None, :, None, None] * (x - m[None, :, None, None]) \
            / jnp.sqrt(v[None, :, None, None] + eps) + bta[None, :, None, None]

    xf_trans = conv1x1(xf, params["query_w"], params["query_b"])
    zf_trans = conv1x1(zf, params["support_w"], params["support_b"])
    xf_g = jax.nn.relu(bn(conv1x1(xf, params["g_w"], params["g_b"]),
                          params["g_bn_gamma"], params["g_bn_beta"],
                          params["g_bn_mean"], params["g_bn_var"]))
    zf_g = jax.nn.relu(bn(conv1x1(zf, params["g_w"], params["g_b"]),
                          params["g_bn_gamma"], params["g_bn_beta"],
                          params["g_bn_mean"], params["g_bn_var"]))

    zf_trans_plain = zf_trans.reshape(B, C, Hz * Wz)
    zf_g_plain = zf_g.reshape(B, C, Hz * Wz).transpose(0, 2, 1)
    xf_trans_plain = xf_trans.reshape(B, C, Hx * Wx).transpose(0, 2, 1)

    similar = jnp.einsum("bnc,bcm->bnm", xf_trans_plain, zf_trans_plain)
    similar = jax.nn.softmax(similar, axis=2)
    embedding = jnp.einsum("bnm,bmc->bnc", similar, zf_g_plain).transpose(0, 2, 1)
    embedding = embedding.reshape(B, C, Hx, Wx)

    cat = jnp.concatenate([embedding, xf_g], axis=1)
    out = jax.nn.relu(bn(conv1x1(cat, params["fi_w"], params["fi_b"]),
                         params["fi_bn_gamma"], params["fi_bn_beta"],
                         params["fi_bn_mean"], params["fi_bn_var"]))
    return out


def make_params(key, in_channel, out_channel):
    ks = jax.random.split(key, 8)
    s = 0.1
    return {
        "query_w": s * jax.random.normal(ks[0], (in_channel, in_channel), jnp.float32),
        "query_b": s * jax.random.normal(ks[1], (in_channel,), jnp.float32),
        "support_w": s * jax.random.normal(ks[2], (in_channel, in_channel), jnp.float32),
        "support_b": s * jax.random.normal(ks[3], (in_channel,), jnp.float32),
        "g_w": s * jax.random.normal(ks[4], (in_channel, in_channel), jnp.float32),
        "g_b": s * jax.random.normal(ks[5], (in_channel,), jnp.float32),
        "fi_w": s * jax.random.normal(ks[6], (out_channel, 2 * in_channel), jnp.float32),
        "fi_b": s * jax.random.normal(ks[7], (out_channel,), jnp.float32),
        # Eval-mode BatchNorm stats/affine (deterministic).
        "g_bn_gamma": jnp.ones((in_channel,), jnp.float32),
        "g_bn_beta": jnp.zeros((in_channel,), jnp.float32),
        "g_bn_mean": jnp.zeros((in_channel,), jnp.float32),
        "g_bn_var": jnp.ones((in_channel,), jnp.float32),
        "fi_bn_gamma": jnp.ones((out_channel,), jnp.float32),
        "fi_bn_beta": jnp.zeros((out_channel,), jnp.float32),
        "fi_bn_mean": jnp.zeros((out_channel,), jnp.float32),
        "fi_bn_var": jnp.ones((out_channel,), jnp.float32),
    }


if __name__ == "__main__":
    key = jax.random.PRNGKey(0)
    k_zf, k_xf, k_p = jax.random.split(key, 3)

    B, C, Cout = 2, 16, 32
    Hz = Wz = 4     # template (zf) spatial
    Hx = Wx = 8     # search   (xf) spatial

    zf = jax.random.normal(k_zf, (B, C, Hz, Wz), jnp.float32)
    xf = jax.random.normal(k_xf, (B, C, Hx, Wx), jnp.float32)
    params = make_params(k_p, C, Cout)

    out = graph_attention_union(zf, xf, params)
    out = jax.block_until_ready(out)

    ref = _reference(zf, xf, params)
    assert out.shape == (B, Cout, Hx, Wx), out.shape
    # bf16 MXU operands + approx reciprocal -> bf16-appropriate tolerance.
    assert jnp.allclose(out, ref, atol=3e-2, rtol=3e-2), \
        float(jnp.max(jnp.abs(out - ref)))

    print("KERNEL_OK")
</pallas_src>

<mosaic_0001>
module attributes {stable_mosaic.version = 11 : i64} {
  func.func @_zf_branch_kernel(%arg0: i32, %arg1: memref<1x128x128xbf16, #tpu.memory_space<vmem>>, %arg2: memref<1x128x128xbf16, #tpu.memory_space<vmem>>, %arg3: memref<128x128xbf16, #tpu.memory_space<vmem>>, %arg4: memref<128x1xf32, #tpu.memory_space<vmem>>, %arg5: memref<128x128xbf16, #tpu.memory_space<vmem>>, %arg6: memref<1x128xf32, #tpu.memory_space<vmem>>, %arg7: memref<1x128x128xbf16, #tpu.memory_space<vmem>>, %arg8: memref<1x128x128xbf16, #tpu.memory_space<vmem>>) attributes {dimension_semantics = [#tpu.dimension_semantics<parallel>], iteration_bounds = array<i64: 2>, scalar_prefetch = 0 : i64, scratch_operands = 0 : i64, tpu.core_type = #tpu.core_type<tc>, window_params = [{transform_indices = @transform_0, window_bounds = array<i64: 1, 128, 128>}, {transform_indices = @transform_1, window_bounds = array<i64: 1, 128, 128>}, {pipeline_mode = #tpu.pipeline_mode<synchronous>, transform_indices = @transform_2, window_bounds = array<i64: 128, 128>}, {pipeline_mode = #tpu.pipeline_mode<synchronous>, transform_indices = @transform_3, window_bounds = array<i64: 128, 1>}, {pipeline_mode = #tpu.pipeline_mode<synchronous>, transform_indices = @transform_4, window_bounds = array<i64: 128, 128>}, {pipeline_mode = #tpu.pipeline_mode<synchronous>, transform_indices = @transform_5, window_bounds = array<i64: 1, 128>}, {transform_indices = @transform_6, window_bounds = array<i64: 1, 128, 128>}, {transform_indices = @transform_7, window_bounds = array<i64: 1, 128, 128>}]} {
    %c0 = arith.constant 0 : index
    %c0_0 = arith.constant 0 : index
    %0 = vector.load %arg3[%c0, %c0_0] : memref<128x128xbf16, #tpu.memory_space<vmem>>, vector<128x128xbf16>
    %c0_1 = arith.constant 0 : index
    %c0_2 = arith.constant 0 : index
    %c0_3 = arith.constant 0 : index
    %1 = vector.load %arg1[%c0_1, %c0_2, %c0_3] : memref<1x128x128xbf16, #tpu.memory_space<vmem>>, vector<1x128x128xbf16>
    %2 = vector.shape_cast %1 : vector<1x128x128xbf16> to vector<128x128xbf16>
    %cst = arith.constant dense<0.000000e+00> : vector<128x128xf32>
    %3 = tpu.matmul %0, %2, %cst {dimension_numbers = #tpu.dot_dimension_numbers<[1], [0], [0], [1], [0, 0, 1, 1], [], []>} : vector<128x128xbf16>, vector<128x128xbf16>, vector<128x128xf32> -> vector<128x128xf32>
    %c0_4 = arith.constant 0 : index
    %c0_5 = arith.constant 0 : index
    %4 = vector.load %arg4[%c0_4, %c0_5] : memref<128x1xf32, #tpu.memory_space<vmem>>, vector<128x1xf32>
    %5 = vector.broadcast %4 : vector<128x1xf32> to vector<128x128xf32>
    %6 = arith.addf %3, %5 : vector<128x128xf32>
    %c0_6 = arith.constant 0 : index
    %c0_7 = arith.constant 0 : index
    %c0_8 = arith.constant 0 : index
    %7 = vector.load %arg2[%c0_6, %c0_7, %c0_8] : memref<1x128x128xbf16, #tpu.memory_space<vmem>>, vector<1x128x128xbf16>
    %8 = vector.shape_cast %7 : vector<1x128x128xbf16> to vector<128x128xbf16>
    %c0_9 = arith.constant 0 : index
    %c0_10 = arith.constant 0 : index
    %9 = vector.load %arg5[%c0_9, %c0_10] : memref<128x128xbf16, #tpu.memory_space<vmem>>, vector<128x128xbf16>
    %cst_11 = arith.constant dense<0.000000e+00> : vector<128x128xf32>
    %10 = tpu.matmul %8, %9, %cst_11 {dimension_numbers = #tpu.dot_dimension_numbers<[1], [0], [0], [1], [0, 0, 1, 1], [], []>} : vector<128x128xbf16>, vector<128x128xbf16>, vector<128x128xf32> -> vector<128x128xf32>
    %c0_12 = arith.constant 0 : index
    %c0_13 = arith.constant 0 : index
    %11 = vector.load %arg6[%c0_12, %c0_13] : memref<1x128xf32, #tpu.memory_space<vmem>>, vector<1x128xf32>
    %12 = vector.broadcast %11 : vector<1x128xf32> to vector<128x128xf32>
    %13 = arith.addf %10, %12 : vector<128x128xf32>
    %cst_14 = arith.constant 0.000000e+00 : f32
    %14 = vector.broadcast %cst_14 : f32 to vector<128x128xf32>
    %15 = arith.maximumf %13, %14 : vector<128x128xf32>
    %16 = arith.truncf %6 : vector<128x128xf32> to vector<128x128xbf16>
    %c0_15 = arith.constant 0 : index
    %c0_16 = arith.constant 0 : index
    %c0_17 = arith.constant 0 : index
    %17 = vector.load %arg7[%c0_15, %c0_16, %c0_17] : memref<1x128x128xbf16, #tpu.memory_space<vmem>>, vector<1x128x128xbf16>
    %18 = vector.shape_cast %17 : vector<1x128x128xbf16> to vector<128x128xbf16>
    %19 = vector.shape_cast %16 : vector<128x128xbf16> to vector<1x128x128xbf16>
    tpu.vector_store %arg7[%c0_15, %c0_16, %c0_17], %19 {strides = array<i32>} : memref<1x128x128xbf16, #tpu.memory_space<vmem>>, vector<1x128x128xbf16>,
    %20 = arith.truncf %15 : vector<128x128xf32> to vector<128x128xbf16>
    %c0_18 = arith.constant 0 : index
    %c0_19 = arith.constant 0 : index
    %c0_20 = arith.constant 0 : index
    %21 = vector.load %arg8[%c0_18, %c0_19, %c0_20] : memref<1x128x128xbf16, #tpu.memory_space<vmem>>, vector<1x128x128xbf16>
    %22 = vector.shape_cast %21 : vector<1x128x128xbf16> to vector<128x128xbf16>
    %23 = vector.shape_cast %20 : vector<128x128xbf16> to vector<1x128x128xbf16>
    tpu.vector_store %arg8[%c0_18, %c0_19, %c0_20], %23 {strides = array<i32>} : memref<1x128x128xbf16, #tpu.memory_space<vmem>>, vector<1x128x128xbf16>,
    return
  }
  func.func @transform_0(%arg0: i32) -> (i32, i32, i32) {
    %c0_i32 = arith.constant 0 : i32
    %c0_i32_0 = arith.constant 0 : i32
    %c0_i32_1 = arith.constant 0 : i32
    return %arg0, %c0_i32, %c0_i32_0 : i32, i32, i32
  }
  func.func @transform_1(%arg0: i32) -> (i32, i32, i32) {
    %c0_i32 = arith.constant 0 : i32
    %c0_i32_0 = arith.constant 0 : i32
    %c0_i32_1 = arith.constant 0 : i32
    return %arg0, %c0_i32, %c0_i32_0 : i32, i32, i32
  }
  func.func @transform_2(%arg0: i32) -> (i32, i32) {
    %c0_i32 = arith.constant 0 : i32
    %c0_i32_0 = arith.constant 0 : i32
    %c0_i32_1 = arith.constant 0 : i32
    return %c0_i32, %c0_i32_0 : i32, i32
  }
  func.func @transform_3(%arg0: i32) -> (i32, i32) {
    %c0_i32 = arith.constant 0 : i32
    %c0_i32_0 = arith.constant 0 : i32
    %c0_i32_1 = arith.constant 0 : i32
    return %c0_i32, %c0_i32_0 : i32, i32
  }
  func.func @transform_4(%arg0: i32) -> (i32, i32) {
    %c0_i32 = arith.constant 0 : i32
    %c0_i32_0 = arith.constant 0 : i32
    %c0_i32_1 = arith.constant 0 : i32
    return %c0_i32, %c0_i32_0 : i32, i32
  }
  func.func @transform_5(%arg0: i32) -> (i32, i32) {
    %c0_i32 = arith.constant 0 : i32
    %c0_i32_0 = arith.constant 0 : i32
    %c0_i32_1 = arith.constant 0 : i32
    return %c0_i32, %c0_i32_0 : i32, i32
  }
  func.func @transform_6(%arg0: i32) -> (i32, i32, i32) {
    %c0_i32 = arith.constant 0 : i32
    %c0_i32_0 = arith.constant 0 : i32
    %c0_i32_1 = arith.constant 0 : i32
    return %arg0, %c0_i32, %c0_i32_0 : i32, i32, i32
  }
  func.func @transform_7(%arg0: i32) -> (i32, i32, i32) {
    %c0_i32 = arith.constant 0 : i32
    %c0_i32_0 = arith.constant 0 : i32
    %c0_i32_1 = arith.constant 0 : i32
    return %arg0, %c0_i32, %c0_i32_0 : i32, i32, i32
  }
}

module attributes {stable_mosaic.version = 11 : i64} {
  func.func @_gau_kernel(%arg0: i32, %arg1: i32, %arg2: memref<1x64x128xbf16, #tpu.memory_space<vmem>>, %arg3: memref<1x128x128xbf16, #tpu.memory_space<vmem>>, %arg4: memref<1x128x128xbf16, #tpu.memory_space<vmem>>, %arg5: memref<128x256xbf16, #tpu.memory_space<vmem>>, %arg6: memref<1x256xf32, #tpu.memory_space<vmem>>, %arg7: memref<128x128xbf16, #tpu.memory_space<vmem>>, %arg8: memref<128x128xbf16, #tpu.memory_space<vmem>>, %arg9: memref<1x128xf32, #tpu.memory_space<vmem>>, %arg10: memref<1x64x128xf32, #tpu.memory_space<vmem>>) attributes {dimension_semantics = [#tpu.dimension_semantics<parallel>, #tpu.dimension_semantics<parallel>], iteration_bounds = array<i64: 2, 1>, scalar_prefetch = 0 : i64, scratch_operands = 0 : i64, tpu.core_type = #tpu.core_type<tc>, window_params = [{transform_indices = @transform_0, window_bounds = array<i64: 1, 64, 128>}, {transform_indices = @transform_1, window_bounds = array<i64: 1, 128, 128>}, {transform_indices = @transform_2, window_bounds = array<i64: 1, 128, 128>}, {pipeline_mode = #tpu.pipeline_mode<synchronous>, transform_indices = @transform_3, window_bounds = array<i64: 128, 256>}, {pipeline_mode = #tpu.pipeline_mode<synchronous>, transform_indices = @transform_4, window_bounds = array<i64: 1, 256>}, {pipeline_mode = #tpu.pipeline_mode<synchronous>, transform_indices = @transform_5, window_bounds = array<i64: 128, 128>}, {pipeline_mode = #tpu.pipeline_mode<synchronous>, transform_indices = @transform_6, window_bounds = array<i64: 128, 128>}, {pipeline_mode = #tpu.pipeline_mode<synchronous>, transform_indices = @transform_7, window_bounds = array<i64: 1, 128>}, {transform_indices = @transform_8, window_bounds = array<i64: 1, 64, 128>}]} {
    %c0 = arith.constant 0 : index
    %c0_0 = arith.constant 0 : index
    %c0_1 = arith.constant 0 : index
    %0 = vector.load %arg2[%c0, %c0_0, %c0_1] : memref<1x64x128xbf16, #tpu.memory_space<vmem>>, vector<1x64x128xbf16>
    %1 = vector.shape_cast %0 : vector<1x64x128xbf16> to vector<64x128xbf16>
    %c0_2 = arith.constant 0 : index
    %c0_3 = arith.constant 0 : index
    %2 = vector.load %arg5[%c0_2, %c0_3] : memref<128x256xbf16, #tpu.memory_space<vmem>>, vector<128x256xbf16>
    %cst = arith.constant dense<0.000000e+00> : vector<64x256xf32>
    %3 = tpu.matmul %1, %2, %cst {dimension_numbers = #tpu.dot_dimension_numbers<[1], [0], [0], [1], [0, 0, 1, 1], [], []>} : vector<64x128xbf16>, vector<128x256xbf16>, vector<64x256xf32> -> vector<64x256xf32>
    %c0_4 = arith.constant 0 : index
    %c0_5 = arith.constant 0 : index
    %4 = vector.load %arg6[%c0_4, %c0_5] : memref<1x256xf32, #tpu.memory_space<vmem>>, vector<1x256xf32>
    %5 = vector.broadcast %4 : vector<1x256xf32> to vector<64x256xf32>
    %6 = arith.addf %3, %5 : vector<64x256xf32>
    %7 = vector.extract_strided_slice %6 {offsets = [0, 0], sizes = [64, 128], strides = [1, 1]} : vector<64x256xf32> to vector<64x128xf32>
    %8 = vector.extract_strided_slice %6 {offsets = [0, 128], sizes = [64, 128], strides = [1, 1]} : vector<64x256xf32> to vector<64x128xf32>
    %cst_6 = arith.constant 0.000000e+00 : f32
    %9 = vector.broadcast %cst_6 : f32 to vector<64x128xf32>
    %10 = arith.maximumf %8, %9 : vector<64x128xf32>
    %11 = arith.truncf %7 : vector<64x128xf32> to vector<64x128xbf16>
    %c0_7 = arith.constant 0 : index
    %c0_8 = arith.constant 0 : index
    %c0_9 = arith.constant 0 : index
    %12 = vector.load %arg3[%c0_7, %c0_8, %c0_9] : memref<1x128x128xbf16, #tpu.memory_space<vmem>>, vector<1x128x128xbf16>
    %13 = vector.shape_cast %12 : vector<1x128x128xbf16> to vector<128x128xbf16>
    %cst_10 = arith.constant dense<0.000000e+00> : vector<64x128xf32>
    %14 = tpu.matmul %11, %13, %cst_10 {dimension_numbers = #tpu.dot_dimension_numbers<[1], [0], [0], [1], [0, 0, 1, 1], [], []>} : vector<64x128xbf16>, vector<128x128xbf16>, vector<64x128xf32> -> vector<64x128xf32>
    %15 = tpu.iota {dimensions = array<i32: 1>} : vector<1x128xi32>
    %c16_i32 = arith.constant 16 : i32
    %16 = vector.broadcast %c16_i32 : i32 to vector<1x128xi32>
    %17 = arith.cmpi slt, %15, %16 : vector<1x128xi32>
    %cst_11 = arith.constant 0.000000e+00 : f32
    %cst_12 = arith.constant -1.000000e+30 : f32
    %18 = vector.broadcast %cst_11 : f32 to vector<1x128xf32>
    %19 = vector.broadcast %cst_12 : f32 to vector<1x128xf32>
    %20 = arith.select %17, %18, %19 : vector<1x128xi1>, vector<1x128xf32>
    %21 = vector.broadcast %20 : vector<1x128xf32> to vector<64x128xf32>
    %22 = arith.addf %14, %21 : vector<64x128xf32>
    %cst_13 = arith.constant dense<0xFF800000> : vector<64xf32>
    %23 = vector.multi_reduction <maximumf>, %22, %cst_13 [1] : vector<64x128xf32> to vector<64xf32>
    %24 = vector.shape_cast %23 : vector<64xf32> to vector<64x1xf32>
    %25 = vector.broadcast %24 : vector<64x1xf32> to vector<64x128xf32>
    %26 = arith.subf %22, %25 : vector<64x128xf32>
    %27 = math.exp %26 : vector<64x128xf32>
    %cst_14 = arith.constant dense<0.000000e+00> : vector<64xf32>
    %28 = vector.multi_reduction <add>, %27, %cst_14 [1] : vector<64x128xf32> to vector<64xf32>
    %29 = vector.shape_cast %28 : vector<64xf32> to vector<64x1xf32>
    %30 = tpu.reciprocal %29 {approx = true} : vector<64x1xf32> -> vector<64x1xf32>
    %31 = vector.broadcast %30 : vector<64x1xf32> to vector<64x128xf32>
    %32 = arith.mulf %27, %31 : vector<64x128xf32>
    %33 = arith.truncf %32 : vector<64x128xf32> to vector<64x128xbf16>
    %c0_15 = arith.constant 0 : index
    %c0_16 = arith.constant 0 : index
    %c0_17 = arith.constant 0 : index
    %34 = vector.load %arg4[%c0_15, %c0_16, %c0_17] : memref<1x128x128xbf16, #tpu.memory_space<vmem>>, vector<1x128x128xbf16>
    %35 = vector.shape_cast %34 : vector<1x128x128xbf16> to vector<128x128xbf16>
    %cst_18 = arith.constant dense<0.000000e+00> : vector<64x128xf32>
    %36 = tpu.matmul %33, %35, %cst_18 {dimension_numbers = #tpu.dot_dimension_numbers<[1], [0], [0], [1], [0, 0, 1, 1], [], []>} : vector<64x128xbf16>, vector<128x128xbf16>, vector<64x128xf32> -> vector<64x128xf32>
    %37 = arith.truncf %36 : vector<64x128xf32> to vector<64x128xbf16>
    %c0_19 = arith.constant 0 : index
    %c0_20 = arith.constant 0 : index
    %38 = vector.load %arg7[%c0_19, %c0_20] : memref<128x128xbf16, #tpu.memory_space<vmem>>, vector<128x128xbf16>
    %cst_21 = arith.constant dense<0.000000e+00> : vector<64x128xf32>
    %39 = tpu.matmul %37, %38, %cst_21 {dimension_numbers = #tpu.dot_dimension_numbers<[1], [0], [0], [1], [0, 0, 1, 1], [], []>} : vector<64x128xbf16>, vector<128x128xbf16>, vector<64x128xf32> -> vector<64x128xf32>
    %40 = arith.truncf %10 : vector<64x128xf32> to vector<64x128xbf16>
    %c0_22 = arith.constant 0 : index
    %c0_23 = arith.constant 0 : index
    %41 = vector.load %arg8[%c0_22, %c0_23] : memref<128x128xbf16, #tpu.memory_space<vmem>>, vector<128x128xbf16>
    %cst_24 = arith.constant dense<0.000000e+00> : vector<64x128xf32>
    %42 = tpu.matmul %40, %41, %cst_24 {dimension_numbers = #tpu.dot_dimension_numbers<[1], [0], [0], [1], [0, 0, 1, 1], [], []>} : vector<64x128xbf16>, vector<128x128xbf16>, vector<64x128xf32> -> vector<64x128xf32>
    %43 = arith.addf %39, %42 : vector<64x128xf32>
    %c0_25 = arith.constant 0 : index
    %c0_26 = arith.constant 0 : index
    %44 = vector.load %arg9[%c0_25, %c0_26] : memref<1x128xf32, #tpu.memory_space<vmem>>, vector<1x128xf32>
    %45 = vector.broadcast %44 : vector<1x128xf32> to vector<64x128xf32>
    %46 = arith.addf %43, %45 : vector<64x128xf32>
    %cst_27 = arith.constant 0.000000e+00 : f32
    %47 = vector.broadcast %cst_27 : f32 to vector<64x128xf32>
    %48 = arith.maximumf %46, %47 : vector<64x128xf32>
    %c0_28 = arith.constant 0 : index
    %c0_29 = arith.constant 0 : index
    %c0_30 = arith.constant 0 : index
    %49 = vector.load %arg10[%c0_28, %c0_29, %c0_30] : memref<1x64x128xf32, #tpu.memory_space<vmem>>, vector<1x64x128xf32>
    %50 = vector.shape_cast %49 : vector<1x64x128xf32> to vector<64x128xf32>
    %51 = vector.shape_cast %48 : vector<64x128xf32> to vector<1x64x128xf32>
    tpu.vector_store %arg10[%c0_28, %c0_29, %c0_30], %51 {strides = array<i32>} : memref<1x64x128xf32, #tpu.memory_space<vmem>>, vector<1x64x128xf32>,
    return
  }
  func.func @transform_0(%arg0: i32, %arg1: i32) -> (i32, i32, i32) {
    %c0_i32 = arith.constant 0 : i32
    %c0_i32_0 = arith.constant 0 : i32
    return %arg0, %arg1, %c0_i32 : i32, i32, i32
  }
  func.func @transform_1(%arg0: i32, %arg1: i32) -> (i32, i32, i32) {
    %c0_i32 = arith.constant 0 : i32
    %c0_i32_0 = arith.constant 0 : i32
    %c0_i32_1 = arith.constant 0 : i32
    return %arg0, %c0_i32, %c0_i32_0 : i32, i32, i32
  }
  func.func @transform_2(%arg0: i32, %arg1: i32) -> (i32, i32, i32) {
    %c0_i32 = arith.constant 0 : i32
    %c0_i32_0 = arith.constant 0 : i32
    %c0_i32_1 = arith.constant 0 : i32
    return %arg0, %c0_i32, %c0_i32_0 : i32, i32, i32
  }
  func.func @transform_3(%arg0: i32, %arg1: i32) -> (i32, i32) {
    %c0_i32 = arith.constant 0 : i32
    %c0_i32_0 = arith.constant 0 : i32
    %c0_i32_1 = arith.constant 0 : i32
    return %c0_i32, %c0_i32_0 : i32, i32
  }
  func.func @transform_4(%arg0: i32, %arg1: i32) -> (i32, i32) {
    %c0_i32 = arith.constant 0 : i32
    %c0_i32_0 = arith.constant 0 : i32
    %c0_i32_1 = arith.constant 0 : i32
    return %c0_i32, %c0_i32_0 : i32, i32
  }
  func.func @transform_5(%arg0: i32, %arg1: i32) -> (i32, i32) {
    %c0_i32 = arith.constant 0 : i32
    %c0_i32_0 = arith.constant 0 : i32
    %c0_i32_1 = arith.constant 0 : i32
    return %c0_i32, %c0_i32_0 : i32, i32
  }
  func.func @transform_6(%arg0: i32, %arg1: i32) -> (i32, i32) {
    %c0_i32 = arith.constant 0 : i32
    %c0_i32_0 = arith.constant 0 : i32
    %c0_i32_1 = arith.constant 0 : i32
    return %c0_i32, %c0_i32_0 : i32, i32
  }
  func.func @transform_7(%arg0: i32, %arg1: i32) -> (i32, i32) {
    %c0_i32 = arith.constant 0 : i32
    %c0_i32_0 = arith.constant 0 : i32
    %c0_i32_1 = arith.constant 0 : i32
    return %c0_i32, %c0_i32_0 : i32, i32
  }
  func.func @transform_8(%arg0: i32, %arg1: i32) -> (i32, i32, i32) {
    %c0_i32 = arith.constant 0 : i32
    %c0_i32_0 = arith.constant 0 : i32
    return %arg0, %arg1, %c0_i32 : i32, i32, i32
  }
}

</mosaic_0001>

<bundles_post_ra>
// kernel: graph_attention_union.3
= control target key start
LH: loop header
LB: loop body
LE: loop exit
PB: predicated region body
PF: predicated region fallthrough
CT: control target
= control target key end

     0   :  { %s1778_s27 = smov 0   ;;  %s1780_s28 = smov 0   ;;  %s1994_s0 = inlined_call_operand.vmem [shape: bf16[2,64,128], index: 0, kind: input, shape index: {}]   ;;  %s1995_s1 = inlined_call_operand.vmem [shape: bf16[2,128,128], index: 1, kind: input, shape index: {}]   ;;  %s1996_s2 = inlined_call_operand.vmem [shape: bf16[2,128,128], index: 2, kind: input, shape index: {}]   ;;  %s1997_s3 = inlined_call_operand.vmem [shape: bf16[128,256], index: 3, kind: input, shape index: {}]   ;;  %s1998_s4 = inlined_call_operand.vmem [shape: f32[1,256], index: 4, kind: input, shape index: {}]   ;;  %s1999_s5 = inlined_call_operand.vmem [shape: bf16[128,128], index: 5, kind: input, shape index: {}]   ;;  %s2000_s6 = inlined_call_operand.vmem [shape: bf16[128,128], index: 6, kind: input, shape index: {}]   ;;  %s2001_s7 = inlined_call_operand.vmem [shape: f32[1,128], index: 7, kind: input, shape index: {}]   ;;  %s2002_s8 = inlined_call_operand.vmem [shape: f32[2,64,128], index: 8, kind: output, shape index: {}]  }
   0x1   :  { %s1782_s29 = smov 0  }
   0x2 LB: > { %s30_s30 = sadd.s32 1, %s1725_s28  ;;  %p1361_p0 = scmp.ge.s32.totalorder %s1729_s29, 1  ;;  %s1729_s29 = sphi %s1782_s29, %s18_s29   ;;  %s1725_s28 = sphi %s1780_s28, %s2004_s28   ;;  %s1721_s27 = sphi %s1778_s27, %s2003_s27  }
   0x3   : > { %p32_p1 = scmp.ge.s32.totalorder %s30_s30, 2  ;;  %p303_p2 = scmp.lt.s32.totalorder %s1729_s29, 3 }
   0x5   : > { %s2006_s30 = smov (%p32_p1, %s30_s30), 0  ;;  %p304_p3 = pnand %p1361_p0, %p303_p2 }
   0x6   : > { %p356_p4 = scmp.lt.s32.totalorder (!%p304_p3), %s1721_s27, 1 }
   0x7   : > { %307 = sbr.rel (%p304_p3) target bundleno = 1195 (0x4ab), region = 52 }
   0xc   : > { %v1615_v0 = vld [vmem:[%s1997_s3 + $0x74] ss:$8 sps:$4 sm:$0xff]   ;;  %v1617_v1 = vld [vmem:[%s1997_s3 + $0x70] ss:$8 sps:$4 sm:$0xff]   ;;  %v1731_v2 = vmov 0   ;;  %s2008_s27 = smov (!%p356_p4, %s1721_s27), 1  ;;  %v412_v30 = vlaneseq }
   0xd   : > { %558 = vmatprep.mubr.bf16.mxu0 %v1731_v2  ;;  %526 = vmatprep.subr.bf16.mxu0 %v1615_v0  ;;  %v1618_v3 = vld [vmem:[%s1997_s3 + $0x64] ss:$8 sps:$4 sm:$0xff]   ;;  %v1620_v4 = vld [vmem:[%s1997_s3 + $0x60] ss:$8 sps:$4 sm:$0xff]   ;;  %v1621_v5 = vld [vmem:[%s1997_s3 + $0x54] ss:$8 sps:$4 sm:$0xff]  }
   0xe   : > { %527 = vmatpush1.bf16.msra.mxu0 %v1617_v1  ;;  %s1425_s19 = sshll.u32 %s2008_s27, 5  ;;  %v1623_v6 = vld [vmem:[%s1997_s3 + $0x50] ss:$8 sps:$4 sm:$0xff]   ;;  %v1624_v7 = vld [vmem:[%s1997_s3 + $0x44] ss:$8 sps:$4 sm:$0xff]   ;;  %s1822_s9 = sshll.u32 %s2008_s27, 6 }
   0xf   : > { %528 = vmatprep.subr.bf16.mxu0 %v1618_v3  ;;  %s1820_s26 = scalar_lea.vmem %s1994_s0, %s1425_s19  ;;  %v1626_v8 = vld [vmem:[%s1997_s3 + $0x40] ss:$8 sps:$4 sm:$0xff]   ;;  %v1627_v9 = vld [vmem:[%s1997_s3 + $0x34] ss:$8 sps:$4 sm:$0xff]   ;;  %s1834_s16 = scalar_lea.vmem %s1995_s1, %s1822_s9  ;;  %v1629_v10 = vld [vmem:[%s1997_s3 + $0x30] ss:$8 sps:$4 sm:$0xff]  }
  0x10   : > { %v1630_v11 = vld [vmem:[%s1997_s3 + $0x24] ss:$8 sps:$4 sm:$0xff]   ;;  %v1643_v12 = vld [vmem:[%s1834_s16 + $0x38] sm:$0xff]   ;;  %v1644_v13 = vld [vmem:[%s1834_s16 + $0x30] sm:$0xff]   ;;  %s1865_s17 = scalar_lea.vmem %s1996_s2, %s1822_s9  ;;  %v413_v31 = vshrl.u32 %v412_v30, 7  ;;  %s1975_s19 = scalar_lea.vmem %s2002_s8, %s1822_s9 }
  0x11   : > { %v1632_v14 = vld [vmem:[%s1997_s3 + $0x20] ss:$8 sps:$4 sm:$0xff]   ;;  %1477 = vmatprep.subr.bf16.mxu1 %v1643_v12  ;;  %v1633_v15 = vld [vmem:[%s1997_s3 + $0x14] ss:$8 sps:$4 sm:$0xff]   ;;  %v1635_v17 = vld [vmem:[%s1997_s3 + $0x10] ss:$8 sps:$4 sm:$0xff]  }
  0x12   : > { %529 = vmatpush1.bf16.msra.mxu0 %v1620_v4  ;;  %1478 = vmatpush3.bf16.msra.mxu1 %v1643_v12  ;;  %v1645_v16 = vld [vmem:[%s1834_s16 + $0x28] sm:$0xff]   ;;  %v1646_v18 = vld [vmem:[%s1834_s16 + $0x20] sm:$0xff]   ;;  %v1641_v23 = vld [vmem:[%s1820_s26 + $0x10] sm:$0xff]   ;;  %v414_v32 = vsub.s32 0, %v413_v31  ;;  %v418_v51 = vsub.s32 1, %v413_v31 }
  0x13   : > { %530 = vmatprep.subr.bf16.mxu0 %v1621_v5  ;;  %1479 = vmatprep.subr.bf16.mxu1 %v1644_v13  ;;  %v1636_v19 = vld [vmem:[%s1997_s3 + $0x4] ss:$8 sps:$4 sm:$0xff]   ;;  %v1638_v20 = vld [vmem:[%s1997_s3] ss:$8 sps:$4 sm:$0xff]   ;;  %v1642_v24 = vld [vmem:[%s1820_s26 + $0x18] sm:$0xff]  }
  0x14   : > { %v1639_v21 = vld [vmem:[%s1820_s26] sm:$0xff]   ;;  %v1640_v22 = vld [vmem:[%s1820_s26 + $0x8] sm:$0xff]   ;;  %v1647_v25 = vld [vmem:[%s1834_s16 + $0x18] sm:$0xff]  }
  0x15   : > { %v1648_v26 = vld [vmem:[%s1834_s16 + $0x10] sm:$0xff]   ;;  %v1649_v27 = vld [vmem:[%s1834_s16 + $0x8] sm:$0xff]   ;;  %v1650_v28 = vld [vmem:[%s1834_s16] sm:$0xff]  }
  0x16   : > { %531 = vmatpush1.bf16.msra.mxu0 %v1623_v6  ;;  %1480 = vmatpush3.bf16.msra.mxu1 %v1644_v13  ;;  %v1651_v29 = vld [vmem:[%s2000_s6 + $0x38] sm:$0xff]   ;;  %v410_v33 = vld [vmem:[%s1998_s4] sm:$0x3]  ;;  %v1652_v49 = vld [vmem:[%s2000_s6 + $0x30] sm:$0xff]  }
  0x17   : > { %532 = vmatprep.subr.bf16.mxu0 %v1624_v7  ;;  %1481 = vmatprep.subr.bf16.mxu1 %v1645_v16  ;;  %v415_v35 = vrot.slane %v410_v33, %v414_v32  ;;  %v1653_v53 = vld [vmem:[%s2000_s6 + $0x28] sm:$0xff]   ;;  %v419_v57 = vrot.slane %v410_v33, %v418_v51  ;;  %v1654_v60 = vld [vmem:[%s2000_s6 + $0x20] sm:$0xff]   ;;  %v1655_v1 = vld [vmem:[%s2000_s6 + $0x18] sm:$0xff]  }
  0x18   : > { %v1658_v12 = vld [vmem:[%s2000_s6] sm:$0xff]  }
  0x1a   : > { %533 = vmatpush1.bf16.msra.mxu0 %v1626_v8  ;;  %1482 = vmatpush3.bf16.msra.mxu1 %v1645_v16  ;;  %v1656_v8 = vld [vmem:[%s2000_s6 + $0x10] sm:$0xff]  }
  0x1b   : > { %534 = vmatprep.subr.bf16.mxu0 %v1627_v9  ;;  %1483 = vmatprep.subr.bf16.mxu1 %v1646_v18 }
  0x1e   : > { %535 = vmatpush1.bf16.msra.mxu0 %v1629_v10  ;;  %1484 = vmatpush3.bf16.msra.mxu1 %v1646_v18  ;;  %v1657_v10 = vld [vmem:[%s2000_s6 + $0x8] sm:$0xff]  }
  0x1f   : > { %536 = vmatprep.subr.bf16.mxu0 %v1630_v11  ;;  %1485 = vmatprep.subr.bf16.mxu1 %v1647_v25 }
  0x22   : > { %537 = vmatpush1.bf16.msra.mxu0 %v1632_v14  ;;  %1486 = vmatpush3.bf16.msra.mxu1 %v1647_v25 }
  0x23   : > { %538 = vmatprep.subr.bf16.mxu0 %v1633_v15  ;;  %1487 = vmatprep.subr.bf16.mxu1 %v1648_v26 }
  0x26   : > { %539 = vmatpush1.bf16.msra.mxu0 %v1635_v17  ;;  %1488 = vmatpush3.bf16.msra.mxu1 %v1648_v26 }
  0x27   : > { %540 = vmatprep.subr.bf16.mxu0 %v1636_v19  ;;  %1489 = vmatprep.subr.bf16.mxu1 %v1649_v27 }
  0x2a   : > { %541 = vmatpush1.bf16.msra.mxu0 %v1638_v20  ;;  %1490 = vmatpush3.bf16.msra.mxu1 %v1649_v27 }
  0x2b   : > { %1491 = vmatprep.subr.bf16.mxu1 %v1650_v28 }
  0x2d   : > { %559 = vmatmul.mubr.bf16.vlgmr.msra.gmra.mxu0 %v1639_v21 }
  0x2e   : > { %568 = vmatprep.mubr.bf16.mxu0 %v1731_v2  ;;  %1492 = vmatpush3.bf16.msra.mxu1 %v1650_v28  ;;  %v628_v28 = vand.u32 127, %v412_v30 }
  0x2f   : > { %1525 = vmatprep.subr.bf16.mxu1 %v1651_v29 }
  0x30   : > { %vm629_vm0 = vcmp.lt.s32.totalorder %v628_v28, 16  ;;  %v1672_v28 = vld [vmem:[%s1999_s5 + $0x10] sm:$0xff]  }
  0x35   : > { %569 = vmatmul.mubr.bf16.gmra.mxu0 %v1640_v22 }
  0x36   : > { %578 = vmatprep.mubr.bf16.mxu0 %v1731_v2 }
  0x3d   : > { %579 = vmatmul.mubr.bf16.gmra.mxu0 %v1641_v23 }
  0x3e   : > { %588 = vmatprep.mubr.bf16.mxu0 %v1731_v2 }
  0x45   : > { %589 = vmatmul.mubr.bf16.gmra.mxu0 %v1642_v24 }
  0xed   : > { %v560_v34 = vpop.f32.mrf.mxu0 }
  0xee   : > { %v561_v38 = vadd.f32 %v560_v34, %v415_v35 }
  0xef   : > { %v562_v36 = vpop.f32.mrf.mxu0 }
  0xf0   : > { %v563_v63 = vadd.f32 %v562_v36, %v419_v57 }
  0xf1   : > { %v564_v37 = vpop.f32.mrf.mxu0 }
  0xf2   : > { %v565_v39 = vadd.f32 %v564_v37, %v415_v35  ;;  %v599_v6 = vmax.f32 %v563_v63, 0.0 }
  0xf3   : > { %v566_v40 = vpop.f32.mrf.mxu0 }
  0xf4   : > { %v607_v41 = vpack.c.bf16 %v565_v39, %v561_v38  ;;  %v567_v61 = vadd.f32 %v566_v40, %v419_v57 }
  0xf5   : > { %v570_v42 = vpop.f32.mrf.mxu0 }
  0xf6   : > { %1493 = vmatprep.mubr.bf16.mxu1 %v607_v41  ;;  %v571_v45 = vadd.f32 %v570_v42, %v415_v35  ;;  %v600_v2 = vmax.f32 %v567_v61, 0.0 }
  0xf7   : > { %v572_v43 = vpop.f32.mrf.mxu0 }
  0xf8   : > { %v969_v9 = vpack.c.bf16 %v600_v2, %v599_v6  ;;  %v573_v14 = vadd.f32 %v572_v43, %v419_v57 }
  0xf9   : > { %v574_v44 = vpop.f32.mrf.mxu0 }
  0xfa   : > { %v575_v46 = vadd.f32 %v574_v44, %v415_v35  ;;  %v601_v19 = vmax.f32 %v573_v14, 0.0 }
  0xfb   : > { %v576_v47 = vpop.f32.mrf.mxu0 }
  0xfc   : > { %v608_v48 = vpack.c.bf16 %v575_v46, %v571_v45  ;;  %v577_v11 = vadd.f32 %v576_v47, %v419_v57  ;;  %v1659_v47 = vld [vmem:[%s1865_s17 + $0x38] sm:$0xff]  }
  0xfd   : > { %v580_v50 = vpop.f32.mrf.mxu0  ;;  %1501 = vmatprep.subr.bf16.mxu0 %v1659_v47 }
  0xfe   : > { %1494 = vmatmul.mubr.bf16.vlgmr.msra.gmra.mxu1 %v608_v48  ;;  %v581_v55 = vadd.f32 %v580_v50, %v415_v35  ;;  %v602_v16 = vmax.f32 %v577_v11, 0.0  ;;  %v1660_v48 = vld [vmem:[%s1865_s17 + $0x30] sm:$0xff]   ;;  %1502 = vmatpush3.bf16.msra.mxu0 %v1659_v47 }
  0xff   : > { %1526 = vmatpush3.bf16.msra.mxu1 %v1651_v29  ;;  %v582_v52 = vpop.f32.mrf.mxu0  ;;  %v1732_v29 = vmov -1e+30   ;;  %1503 = vmatprep.subr.bf16.mxu0 %v1660_v48 }
 0x100   : > { %1527 = vmatprep.subr.bf16.mxu1 %v1652_v49  ;;  %v583_v15 = vadd.f32 %v582_v52, %v419_v57  ;;  %v970_v21 = vpack.c.bf16 %v602_v16, %v601_v19  ;;  %v630_v31 = vsel %vm629_vm0, 0.0, %v1732_v29  ;;  %v1663_v16 = vld [vmem:[%s1865_s17 + $0x18] sm:$0xff]  }
 0x101   : > { %v584_v54 = vpop.f32.mrf.mxu0 }
 0x102   : > { %v585_v56 = vadd.f32 %v584_v54, %v415_v35  ;;  %v603_v20 = vmax.f32 %v583_v15, 0.0  ;;  %1504 = vmatpush3.bf16.msra.mxu0 %v1660_v48  ;;  %v1662_v15 = vld [vmem:[%s1865_s17 + $0x20] sm:$0xff]  }
 0x103   : > { %1528 = vmatpush3.bf16.msra.mxu1 %v1652_v49  ;;  %v586_v58 = vpop.f32.mrf.mxu0 }
 0x104   : > { %v609_v59 = vpack.c.bf16 %v585_v56, %v581_v55  ;;  %1529 = vmatprep.subr.bf16.mxu1 %v1653_v53  ;;  %v587_v13 = vadd.f32 %v586_v58, %v419_v57 }
 0x105   : > { %v590_v62 = vpop.f32.mrf.mxu0 }
 0x106   : > { %1497 = vmatprep.mubr.bf16.mxu1 %v609_v59  ;;  %v591_v4 = vadd.f32 %v590_v62, %v415_v35  ;;  %v604_v17 = vmax.f32 %v587_v13, 0.0  ;;  %v1661_v13 = vld [vmem:[%s1865_s17 + $0x28] sm:$0xff]  }
 0x107   : > { %1530 = vmatpush3.bf16.msra.mxu1 %v1653_v53  ;;  %v592_v0 = vpop.f32.mrf.mxu0  ;;  %1505 = vmatprep.subr.bf16.mxu0 %v1661_v13 }
 0x108   : > { %1531 = vmatprep.subr.bf16.mxu1 %v1654_v60  ;;  %v971_v23 = vpack.c.bf16 %v604_v17, %v603_v20  ;;  %v593_v24 = vadd.f32 %v592_v0, %v419_v57  ;;  %1506 = vmatpush3.bf16.msra.mxu0 %v1661_v13 }
 0x109   : > { %v594_v3 = vpop.f32.mrf.mxu0  ;;  %1507 = vmatprep.subr.bf16.mxu0 %v1662_v15 }
 0x10a   : > { %v595_v5 = vadd.f32 %v594_v3, %v415_v35  ;;  %v605_v26 = vmax.f32 %v593_v24, 0.0  ;;  %v1668_v24 = vld [vmem:[%s1999_s5 + $0x30] sm:$0xff]  }
 0x10b   : > { %1532 = vmatpush3.bf16.msra.mxu1 %v1654_v60  ;;  %v596_v18 = vpop.f32.mrf.mxu0 }
 0x10c   : > { %v610_v7 = vpack.c.bf16 %v595_v5, %v591_v4  ;;  %1533 = vmatprep.subr.bf16.mxu1 %v1655_v1  ;;  %v597_v22 = vadd.f32 %v596_v18, %v419_v57  ;;  %1508 = vmatpush3.bf16.msra.mxu0 %v1662_v15  ;;  %v1664_v18 = vld [vmem:[%s1865_s17 + $0x10] sm:$0xff]  }
 0x10d   : > { %1509 = vmatprep.subr.bf16.mxu0 %v1663_v16 }
 0x10e   : > { %1498 = vmatmul.mubr.bf16.gmra.mxu1 %v610_v7  ;;  %v606_v25 = vmax.f32 %v597_v22, 0.0  ;;  %v1666_v22 = vld [vmem:[%s1865_s17] sm:$0xff]  }
 0x10f   : > { %1534 = vmatpush3.bf16.msra.mxu1 %v1655_v1  ;;  %1541 = vmatprep.mubr.bf16.mxu1 %v969_v9 }
 0x110   : > { %1535 = vmatprep.subr.bf16.mxu1 %v1656_v8  ;;  %v972_v27 = vpack.c.bf16 %v606_v25, %v605_v26  ;;  %1510 = vmatpush3.bf16.msra.mxu0 %v1663_v16  ;;  %v1669_v25 = vld [vmem:[%s1999_s5 + $0x28] sm:$0xff]   ;;  %v1670_v26 = vld [vmem:[%s1999_s5 + $0x20] sm:$0xff]  }
 0x111   : > { %1511 = vmatprep.subr.bf16.mxu0 %v1664_v18 }
 0x113   : > { %1536 = vmatpush3.bf16.msra.mxu1 %v1656_v8 }
 0x114   : > { %1537 = vmatprep.subr.bf16.mxu1 %v1657_v10  ;;  %1512 = vmatpush3.bf16.msra.mxu0 %v1664_v18 }
 0x117   : > { %1538 = vmatpush3.bf16.msra.mxu1 %v1657_v10 }
 0x118   : > { %1539 = vmatprep.subr.bf16.mxu1 %v1658_v12 }
 0x11b   : > { %1540 = vmatpush3.bf16.msra.mxu1 %v1658_v12 }
 0x11e   : > { %1542 = vmatmul.mubr.bf16.vlgmr.msra.gmra.mxu1 %v970_v21  ;;  %v1665_v21 = vld [vmem:[%s1865_s17 + $0x8] sm:$0xff]  }
 0x11f   : > { %1545 = vmatprep.mubr.bf16.mxu1 %v971_v23  ;;  %1513 = vmatprep.subr.bf16.mxu0 %v1665_v21  ;;  %v1667_v23 = vld [vmem:[%s1999_s5 + $0x38] sm:$0xff]  }
 0x120   : > { %1514 = vmatpush3.bf16.msra.mxu0 %v1665_v21  ;;  %1573 = vmatprep.subr.bf16.mxu1 %v1667_v23 }
 0x121   : > { %1515 = vmatprep.subr.bf16.mxu0 %v1666_v22  ;;  %1581 = vmatpush3.bf16.msra.mxu1 %v1667_v23 }
 0x122   : > { %1574 = vmatprep.subr.bf16.mxu1 %v1668_v24 }
 0x124   : > { %1516 = vmatpush3.bf16.msra.mxu0 %v1666_v22 }
 0x125   : > { %1549 = vmatprep.subr.bf16.mxu0 %v1667_v23  ;;  %1582 = vmatpush3.bf16.msra.mxu1 %v1668_v24 }
 0x126   : > { %1546 = vmatmul.mubr.bf16.gmra.mxu1 %v972_v27  ;;  %1575 = vmatprep.subr.bf16.mxu1 %v1669_v25  ;;  %v1671_v27 = vld [vmem:[%s1999_s5 + $0x18] sm:$0xff]  }
 0x129   : > { %1583 = vmatpush3.bf16.msra.mxu1 %v1669_v25 }
 0x12a   : > { %1576 = vmatprep.subr.bf16.mxu1 %v1670_v26 }
 0x12d   : > { %1584 = vmatpush3.bf16.msra.mxu1 %v1670_v26 }
 0x12e   : > { %1577 = vmatprep.subr.bf16.mxu1 %v1671_v27 }
 0x131   : > { %1585 = vmatpush3.bf16.msra.mxu1 %v1671_v27 }
 0x132   : > { %1578 = vmatprep.subr.bf16.mxu1 %v1672_v28 }
 0x135   : > { %1586 = vmatpush3.bf16.msra.mxu1 %v1672_v28 }
 0x1be   : > { %v1495_v32 = vpop.f32.mrf.mxu1 }
 0x1bf   : > { %v722_v33 = vadd.f32 %v1495_v32, %v630_v31 }
 0x1c0   : > { %v713_v34 = vpop.f32.mrf.mxu1 }
 0x1c1   : > { %v714_v35 = vadd.f32 %v713_v34, %v630_v31  ;;  %748 = vmax.xlane.f32.xlu1 %v722_v33 }
 0x1c2   : > { %v1496_v36 = vpop.f32.mrf.mxu1 }
 0x1c3   : > { %v725_v37 = vadd.f32 %v1496_v36, %v630_v31  ;;  %744 = vmax.xlane.f32.xlu0 %v714_v35 }
 0x1c4   : > { %v716_v38 = vpop.f32.mrf.mxu1 }
 0x1c5   : > { %v717_v39 = vadd.f32 %v716_v38, %v630_v31  ;;  %750 = vmax.xlane.f32.xlu1 %v725_v37 }
 0x1c7   : > { %746 = vmax.xlane.f32.xlu0 %v717_v39 }
 0x1ce   : > { %v1499_v40 = vpop.f32.mrf.mxu1 }
 0x1cf   : > { %v738_v44 = vadd.f32 %v1499_v40, %v630_v31 }
 0x1d0   : > { %v729_v41 = vpop.f32.mrf.mxu1 }
 0x1d1   : > { %v730_v30 = vadd.f32 %v729_v41, %v630_v31 }
 0x1d2   : > { %v1500_v42 = vpop.f32.mrf.mxu1 }
 0x1d3   : > { %752 = vmax.xlane.f32.xlu0 %v730_v30  ;;  %v741_v46 = vadd.f32 %v1500_v42, %v630_v31 }
 0x1d4   : > { %v732_v43 = vpop.f32.mrf.mxu1 }
 0x1d5   : > { %v733_v45 = vadd.f32 %v732_v43, %v630_v31 }
 0x1d7   : > { %754 = vmax.xlane.f32.xlu1 %v733_v45  ;;  %756 = vmax.xlane.f32.xlu0 %v738_v44 }
 0x1db   : > { %758 = vmax.xlane.f32.xlu1 %v741_v46 }
 0x24a   : > { %v749_v49 = vpop.xlane.xlu1 %748 }
 0x24b   : > { %v762_v50 = vsub.f32 %v722_v33, %v749_v49 }
 0x24c   : > { %v745_v51 = vpop.xlane.xlu0 %744 }
 0x24d   : > { %v760_v52 = vsub.f32 %v714_v35, %v745_v51  ;;  %v772_v55 = vmul.f32 1.442695, %v762_v50 }
 0x24e   : > { %v751_v53 = vpop.xlane.xlu1 %750 }
 0x24f   : > { %v768_v54 = vmul.f32 1.442695, %v760_v52  ;;  %v763_v57 = vsub.f32 %v725_v37, %v751_v53 }
 0x250   : > { %v747_v56 = vpop.xlane.xlu0 %746 }
 0x251   : > { %1675 = vpow2.f32 %v768_v54  ;;  %v761_v58 = vsub.f32 %v717_v39, %v747_v56  ;;  %v774_v60 = vmul.f32 1.442695, %v763_v57  ;;  %v1673_v57 = vld [vmem:[%s1999_s5 + $0x8] sm:$0xff]  }
 0x252   : > { %1677 = vpow2.f32 %v772_v55  ;;  %1579 = vmatprep.subr.bf16.mxu1 %v1673_v57 }
 0x253   : > { %v770_v59 = vmul.f32 1.442695, %v761_v58  ;;  %1587 = vmatpush3.bf16.msra.mxu1 %v1673_v57  ;;  %v1674_v58 = vld [vmem:[%s1999_s5] sm:$0xff]  }
 0x254   : > { %1580 = vmatprep.subr.bf16.mxu1 %v1674_v58 }
 0x255   : > { %1679 = vpow2.f32 %v770_v59 }
 0x256   : > { %1681 = vpow2.f32 %v774_v60 }
 0x257   : > { %1588 = vmatpush3.bf16.msra.mxu1 %v1674_v58 }
 0x25c   : > { %v753_v61 = vpop.xlane.xlu0 %752 }
 0x25d   : > { %v764_v62 = vsub.f32 %v730_v30, %v753_v61 }
 0x25e   : > { %v1906_v63 = vpop.eup %1675 }
 0x25f   : > { %v776_v0 = vmul.f32 1.442695, %v764_v62  ;;  %784 = vadd.xlane.f32.xlu0 %v1906_v63  ;;  %v1909_v3 = vpop.eup %1677 }
 0x260   : > { %v755_v1 = vpop.xlane.xlu1 %754  ;;  %v757_v2 = vpop.xlane.xlu0 %756 }
 0x261   : > { %1683 = vpow2.f32 %v776_v0  ;;  %v765_v4 = vsub.f32 %v733_v45, %v755_v1  ;;  %v766_v5 = vsub.f32 %v738_v44, %v757_v2 }
 0x262   : > { %v1911_v6 = vpop.eup %1679 }
 0x263   : > { %v778_v7 = vmul.f32 1.442695, %v765_v4  ;;  %v780_v8 = vmul.f32 1.442695, %v766_v5  ;;  %788 = vadd.xlane.f32.xlu0 %v1909_v3  ;;  %786 = vadd.xlane.f32.xlu1 %v1911_v6  ;;  %v1915_v11 = vpop.eup %1681 }
 0x264   : > { %v759_v9 = vpop.xlane.xlu1 %758 }
 0x265   : > { %1685 = vpow2.f32 %v778_v7  ;;  %v767_v10 = vsub.f32 %v741_v46, %v759_v9  ;;  %v1543_v7 = vpop.f32.mrf.mxu1 }
 0x266   : > { %1687 = vpow2.f32 %v780_v8 }
 0x267   : > { %v782_v12 = vmul.f32 1.442695, %v767_v10  ;;  %790 = vadd.xlane.f32.xlu1 %v1915_v11  ;;  %v1071_v8 = vpop.f32.mrf.mxu1 }
 0x269   : > { %1689 = vpow2.f32 %v782_v12  ;;  %v1544_v9 = vpop.f32.mrf.mxu1  ;;  %v1422_v12 = vld [vmem:[%s2001_s7] ss:$0 sm:$0xff] }
 0x26b   : > { %v1074_v10 = vpop.f32.mrf.mxu1 }
 0x26e   : > { %v1919_v14 = vpop.eup %1683 }
 0x26f   : > { %792 = vadd.xlane.f32.xlu0 %v1919_v14 }
 0x272   : > { %v1924_v17 = vpop.eup %1685 }
 0x273   : > { %v1927_v19 = vpop.eup %1687  ;;  %794 = vadd.xlane.f32.xlu1 %v1924_v17 }
 0x274   : > { %796 = vadd.xlane.f32.xlu0 %v1927_v19 }
 0x276   : > { %v1931_v20 = vpop.eup %1689 }
 0x277   : > { %798 = vadd.xlane.f32.xlu1 %v1931_v20 }
 0x2e8   : > { %v785_v29 = vpop.xlane.xlu0 %784 }
 0x2e9   : > { %1691 = vrcp.f32 %v785_v29 }
 0x2ec   : > { %v787_v31 = vpop.xlane.xlu1 %786  ;;  %v789_v32 = vpop.xlane.xlu0 %788 }
 0x2ed   : > { %1693 = vrcp.f32 %v787_v31 }
 0x2ee   : > { %1695 = vrcp.f32 %v789_v32 }
 0x2f0   : > { %v791_v33 = vpop.xlane.xlu1 %790 }
 0x2f1   : > { %1697 = vrcp.f32 %v791_v33 }
 0x2f6   : > { %v1692_v34 = vpop.eup %1691 }
 0x2f7   : > { %v808_v37 = vmul.f32 %v1692_v34, %v1906_v63 }
 0x2f8   : > { %v793_v35 = vpop.xlane.xlu0 %792 }
 0x2f9   : > { %1699 = vrcp.f32 %v793_v35 }
 0x2fa   : > { %v1694_v36 = vpop.eup %1693 }
 0x2fb   : > { %v809_v38 = vmul.f32 %v1694_v36, %v1911_v6  ;;  %v1696_v39 = vpop.eup %1695 }
 0x2fc   : > { %v795_v40 = vpop.xlane.xlu1 %794  ;;  %v810_v43 = vmul.f32 %v1696_v39, %v1909_v3 }
 0x2fd   : > { %1701 = vrcp.f32 %v795_v40  ;;  %v797_v41 = vpop.xlane.xlu0 %796  ;;  %v816_v30 = vpack.c.bf16 %v809_v38, %v808_v37 }
 0x2fe   : > { %v1698_v42 = vpop.eup %1697  ;;  %1703 = vrcp.f32 %v797_v41 }
 0x2ff   : > { %1517 = vmatprep.mubr.bf16.mxu0 %v816_v30  ;;  %v811_v44 = vmul.f32 %v1698_v42, %v1915_v11 }
 0x300   : > { %v799_v45 = vpop.xlane.xlu1 %798 }
 0x301   : > { %1705 = vrcp.f32 %v799_v45  ;;  %v817_v46 = vpack.c.bf16 %v811_v44, %v810_v43 }
 0x303   : > { %1518 = vmatmul.mubr.bf16.vlgmr.msra.gmra.mxu0 %v817_v46 }
 0x304   : > { %1550 = vmatpush3.bf16.msra.mxu0 %v1667_v23 }
 0x305   : > { %1551 = vmatprep.subr.bf16.mxu0 %v1668_v24 }
 0x306   : > { %v1700_v47 = vpop.eup %1699 }
 0x307   : > { %v812_v49 = vmul.f32 %v1700_v47, %v1919_v14  ;;  %v1547_v14 = vpop.f32.mrf.mxu1 }
 0x308   : > { %1552 = vmatpush3.bf16.msra.mxu0 %v1668_v24 }
 0x309   : > { %1553 = vmatprep.subr.bf16.mxu0 %v1669_v25  ;;  %v1087_v22 = vpop.f32.mrf.mxu1 }
 0x30a   : > { %v1702_v48 = vpop.eup %1701 }
 0x30b   : > { %v813_v50 = vmul.f32 %v1702_v48, %v1924_v17  ;;  %v1704_v51 = vpop.eup %1703  ;;  %v1548_v29 = vpop.f32.mrf.mxu1 }
 0x30c   : > { %1554 = vmatpush3.bf16.msra.mxu0 %v1669_v25  ;;  %v814_v54 = vmul.f32 %v1704_v51, %v1927_v19 }
 0x30d   : > { %v818_v52 = vpack.c.bf16 %v813_v50, %v812_v49  ;;  %1555 = vmatprep.subr.bf16.mxu0 %v1670_v26  ;;  %v1090_v32 = vpop.f32.mrf.mxu1 }
 0x30e   : > { %v1706_v53 = vpop.eup %1705 }
 0x30f   : > { %1521 = vmatprep.mubr.bf16.mxu0 %v818_v52  ;;  %v815_v55 = vmul.f32 %v1706_v53, %v1931_v20 }
 0x310   : > { %1556 = vmatpush3.bf16.msra.mxu0 %v1670_v26 }
 0x311   : > { %v819_v56 = vpack.c.bf16 %v815_v55, %v814_v54  ;;  %1557 = vmatprep.subr.bf16.mxu0 %v1671_v27 }
 0x313   : > { %1522 = vmatmul.mubr.bf16.gmra.mxu0 %v819_v56 }
 0x314   : > { %1558 = vmatpush3.bf16.msra.mxu0 %v1671_v27 }
 0x315   : > { %1559 = vmatprep.subr.bf16.mxu0 %v1672_v28 }
 0x318   : > { %1560 = vmatpush3.bf16.msra.mxu0 %v1672_v28 }
 0x319   : > { %1561 = vmatprep.subr.bf16.mxu0 %v1673_v57 }
 0x31c   : > { %1562 = vmatpush3.bf16.msra.mxu0 %v1673_v57 }
 0x31d   : > { %1563 = vmatprep.subr.bf16.mxu0 %v1674_v58 }
 0x320   : > { %1564 = vmatpush3.bf16.msra.mxu0 %v1674_v58 }
 0x3c3   : > { %v1519_v59 = vpop.f32.mrf.mxu0 }
 0x3c5   : > { %v918_v60 = vpop.f32.mrf.mxu0 }
 0x3c7   : > { %v1520_v61 = vpop.f32.mrf.mxu0 }
 0x3c8   : > { %v950_v0 = vpack.c.bf16 %v1520_v61, %v1519_v59 }
 0x3c9   : > { %v921_v62 = vpop.f32.mrf.mxu0 }
 0x3ca   : > { %v949_v63 = vpack.c.bf16 %v921_v62, %v918_v60 }
 0x3cc   : > { %1565 = vmatprep.mubr.bf16.mxu0 %v949_v63 }
 0x3cd   : > { %1566 = vmatmul.mubr.bf16.vlgmr.msra.gmra.mxu0 %v950_v0 }
 0x3d3   : > { %v1523_v1 = vpop.f32.mrf.mxu0 }
 0x3d5   : > { %v934_v2 = vpop.f32.mrf.mxu0 }
 0x3d7   : > { %v1524_v3 = vpop.f32.mrf.mxu0 }
 0x3d8   : > { %v952_v6 = vpack.c.bf16 %v1524_v3, %v1523_v1 }
 0x3d9   : > { %v937_v4 = vpop.f32.mrf.mxu0 }
 0x3da   : > { %v951_v5 = vpack.c.bf16 %v937_v4, %v934_v2 }
 0x3dc   : > { %1569 = vmatprep.mubr.bf16.mxu1 %v951_v5 }
 0x3dd   : > { %1570 = vmatmul.mubr.bf16.vlgmr.msra.gmra.mxu1 %v952_v6 }
 0x48d   : > { %v1567_v11 = vpop.f32.mrf.mxu0 }
 0x48e   : > { %v1193_v13 = vadd.f32 %v1567_v11, %v1543_v7 }
 0x48f   : > { %v1184_v15 = vpop.f32.mrf.mxu0 }
 0x490   : > { %v1224_v16 = vadd.f32 %v1422_v12, %v1193_v13  ;;  %v1185_v17 = vadd.f32 %v1184_v15, %v1071_v8 }
 0x491   : > { %v1568_v18 = vpop.f32.mrf.mxu0 }
 0x492   : > { %v1232_v19 = vmax.f32 %v1224_v16, 0.0  ;;  %v1222_v20 = vadd.f32 %v1422_v12, %v1185_v17  ;;  %v1196_v21 = vadd.f32 %v1568_v18, %v1544_v9 }
 0x493   : > { %v1187_v23 = vpop.f32.mrf.mxu0 }
 0x494   : > { %1240 = vst [vmem:[%s1975_s19 + $0x10] sm:$0xff] %v1232_v19  ;;  %v1230_v24 = vmax.f32 %v1222_v20, 0.0  ;;  %v1225_v25 = vadd.f32 %v1422_v12, %v1196_v21  ;;  %v1188_v26 = vadd.f32 %v1187_v23, %v1074_v10 }
 0x496   : > { %1238 = vst [vmem:[%s1975_s19] sm:$0xff] %v1230_v24  ;;  %v1233_v27 = vmax.f32 %v1225_v25, 0.0  ;;  %v1223_v28 = vadd.f32 %v1422_v12, %v1188_v26 }
 0x498   : > { %1241 = vst [vmem:[%s1975_s19 + $0x18] sm:$0xff] %v1233_v27  ;;  %v1231_v31 = vmax.f32 %v1223_v28, 0.0 }
 0x49a   : > { %1239 = vst [vmem:[%s1975_s19 + $0x8] sm:$0xff] %v1231_v31 }
 0x49d   : > { %v1571_v33 = vpop.f32.mrf.mxu1 }
 0x49e   : > { %v1209_v34 = vadd.f32 %v1571_v33, %v1547_v14 }
 0x49f   : > { %v1200_v35 = vpop.f32.mrf.mxu1 }
 0x4a0   : > { %v1228_v36 = vadd.f32 %v1422_v12, %v1209_v34  ;;  %v1201_v37 = vadd.f32 %v1200_v35, %v1087_v22 }
 0x4a1   : > { %v1572_v38 = vpop.f32.mrf.mxu1 }
 0x4a2   : > { %v1236_v39 = vmax.f32 %v1228_v36, 0.0  ;;  %v1226_v40 = vadd.f32 %v1422_v12, %v1201_v37  ;;  %v1212_v41 = vadd.f32 %v1572_v38, %v1548_v29 }
 0x4a3   : > { %v1203_v30 = vpop.f32.mrf.mxu1 }
 0x4a4   : > { %1244 = vst [vmem:[%s1975_s19 + $0x30] sm:$0xff] %v1236_v39  ;;  %v1234_v42 = vmax.f32 %v1226_v40, 0.0  ;;  %v1229_v43 = vadd.f32 %v1422_v12, %v1212_v41  ;;  %v1204_v44 = vadd.f32 %v1203_v30, %v1090_v32 }
 0x4a6   : > { %1242 = vst [vmem:[%s1975_s19 + $0x20] sm:$0xff] %v1234_v42  ;;  %v1237_v45 = vmax.f32 %v1229_v43, 0.0  ;;  %v1227_v46 = vadd.f32 %v1422_v12, %v1204_v44 }
 0x4a8   : > { %1245 = vst [vmem:[%s1975_s19 + $0x38] sm:$0xff] %v1237_v45  ;;  %v1235_v47 = vmax.f32 %v1227_v46, 0.0 }
 0x4aa   : > { %1243 = vst [vmem:[%s1975_s19 + $0x28] sm:$0xff] %v1235_v47 }
 0x4ab PF: > { %s18_s29 = sadd.s32 1, %s1729_s29   ;;  %s2003_s27 = smov %s1725_s28 }
 0x4ac   : > { %p15_p5 = scmp.ge.s32.totalorder %s18_s29, 4   ;;  %s2004_s28 = smov %s2006_s30 }
 0x4ae   :  { %17 = sbr.rel (!%p15_p5) target bundleno = 2 (0x2), region = 88 }

// kernel: graph_attention_union.2
= control target key start
LH: loop header
LB: loop body
LE: loop exit
PB: predicated region body
PF: predicated region fallthrough
CT: control target
= control target key end

     0   :  { %s1540_s24 = smov 0   ;;  %s1729_s0 = inlined_call_operand.vmem [shape: bf16[2,128,128], index: 0, kind: input, shape index: {}]   ;;  %s1730_s1 = inlined_call_operand.vmem [shape: bf16[2,128,128], index: 1, kind: input, shape index: {}]   ;;  %s1731_s2 = inlined_call_operand.vmem [shape: bf16[128,128], index: 2, kind: input, shape index: {}]   ;;  %s1732_s3 = inlined_call_operand.vmem [shape: f32[128,1], index: 3, kind: input, shape index: {}]   ;;  %s1733_s4 = inlined_call_operand.vmem [shape: bf16[128,128], index: 4, kind: input, shape index: {}]   ;;  %s1734_s5 = inlined_call_operand.vmem [shape: f32[1,128], index: 5, kind: input, shape index: {}]   ;;  %s1735_s6 = inlined_call_operand.vmem [shape: bf16[2,128,128], index: 6, kind: output, shape index: {0}]   ;;  %s1736_s7 = inlined_call_operand.vmem [shape: bf16[2,128,128], index: 7, kind: output, shape index: {1}]  }
   0x1 LB: > { %s1142_s25 = sadd.s32 4294967295, %s1497_s24   ;;  %p1146_p0 = scmp.ge.s32.totalorder %s1497_s24, 1  ;;  %s1497_s24 = sphi %s1540_s24, %s18_s24  }
   0x2   : > { %p250_p1 = scmp.lt.s32.totalorder %s1497_s24, 3 }
   0x4   : > { %p251_p2 = pnand %p1146_p0, %p250_p1 }
   0x5   : > { %p292_p3 = scmp.lt.s32.totalorder (!%p251_p2), %s1142_s25, 1 }
   0x6   : > { %254 = sbr.rel (%p251_p2) target bundleno = 275 (0x113), region = 44 }
   0xb   : > { %v1459_v0 = vld [vmem:[%s1733_s4 + $0x38] sm:$0xff]   ;;  %v1460_v1 = vld [vmem:[%s1733_s4 + $0x30] sm:$0xff]   ;;  %s1738_s25 = smov (!%p292_p3, %s1142_s25), 1  ;;  %v1499_v2 = vmov 0   ;;  %v1462_v3 = vld [vmem:[%s1733_s4 + $0x28] sm:$0xff]  }
   0xc   : > { %1416 = vmatprep.subr.bf16.mxu1 %v1459_v0  ;;  %1458 = vset.pattern.permute.xlu1 %v1499_v2  ;;  %s1554_s30 = sshll.u32 %s1738_s25, 6  ;;  %v1464_v6 = vld [vmem:[%s1733_s4 + $0x20] sm:$0xff]   ;;  %v1466_v8 = vld [vmem:[%s1733_s4 + $0x18] sm:$0xff]   ;;  %v1468_v11 = vld [vmem:[%s1733_s4 + $0x10] sm:$0xff]  }
   0xd   : > { %1417 = vmatpush3.bf16.msra.mxu1 %v1459_v0  ;;  %1457 = vset.pattern.permute.xlu0 %v1499_v2  ;;  %s1563_s12 = scalar_lea.vmem %s1729_s0, %s1554_s30  ;;  %s1578_s19 = scalar_lea.vmem %s1730_s1, %s1554_s30  ;;  %v1477_v13 = vld [vmem:[%s1731_s2] sm:$0xff]   ;;  %v1470_v14 = vld [vmem:[%s1733_s4 + $0x8] sm:$0xff]   ;;  %v347_v21 = vld [vmem:[%s1732_s3 + $0x10] sm:$0xff] }
   0xe   : > { %1418 = vmatprep.subr.bf16.mxu1 %v1460_v1  ;;  %v1461_v4 = vld [vmem:[%s1563_s12 + $0x38] sm:$0xff]   ;;  %v1463_v5 = vld [vmem:[%s1563_s12 + $0x30] sm:$0xff]   ;;  %v1465_v7 = vld [vmem:[%s1563_s12 + $0x28] sm:$0xff]   ;;  %1400 = vmatprep.mubr.bf16.mxu0 %v1477_v13  ;;  %s1689_s16 = scalar_lea.vmem %s1736_s7, %s1554_s30  ;;  %s1697_s20 = scalar_lea.vmem %s1735_s6, %s1554_s30 }
   0xf   : > { %1384 = vmatprep.subr.bf16.mxu0 %v1461_v4  ;;  %v1467_v9 = vld [vmem:[%s1563_s12 + $0x20] sm:$0xff]   ;;  %v1469_v12 = vld [vmem:[%s1563_s12 + $0x18] sm:$0xff]   ;;  %v1471_v15 = vld [vmem:[%s1563_s12 + $0x10] sm:$0xff]   ;;  %373 = vperm.xlu1 %1458, %v347_v21  }
  0x10   : > { %1385 = vmatpush3.bf16.msra.mxu0 %v1461_v4  ;;  %v1474_v10 = vld [vmem:[%s1578_s19] sm:$0xff]   ;;  %v1473_v17 = vld [vmem:[%s1563_s12 + $0x8] sm:$0xff]   ;;  %v1479_v20 = vld [vmem:[%s1578_s19 + $0x10] sm:$0xff]  }
  0x11   : > { %1419 = vmatpush3.bf16.msra.mxu1 %v1460_v1  ;;  %1386 = vmatprep.subr.bf16.mxu0 %v1463_v5  ;;  %v1472_v16 = vld [vmem:[%s1733_s4] sm:$0xff]   ;;  %v1475_v18 = vld [vmem:[%s1578_s19 + $0x8] sm:$0xff]   ;;  %v348_v23 = vld [vmem:[%s1732_s3 + $0x18] sm:$0xff] }
  0x12   : > { %1420 = vmatprep.subr.bf16.mxu1 %v1462_v3  ;;  %1432 = vmatprep.mubr.bf16.mxu1 %v1474_v10  ;;  %v1476_v19 = vld [vmem:[%s1563_s12] sm:$0xff]   ;;  %v1478_v24 = vld [vmem:[%s1731_s2 + $0x8] sm:$0xff]   ;;  %v1481_v26 = vld [vmem:[%s1731_s2 + $0x10] sm:$0xff]  }
  0x13   : > { %v345_v22 = vld [vmem:[%s1732_s3] sm:$0xff]  ;;  %v346_v25 = vld [vmem:[%s1732_s3 + $0x8] sm:$0xff]  ;;  %378 = vperm.xlu1 %1458, %v348_v23   ;;  %v1480_v27 = vld [vmem:[%s1578_s19 + $0x18] sm:$0xff]  }
  0x14   : > { %1387 = vmatpush3.bf16.msra.mxu0 %v1463_v5  ;;  %363 = vperm.xlu0 %1457, %v345_v22   ;;  %v350_v28 = vld [vmem:[%s1732_s3 + $0x28] sm:$0xff]  ;;  %v1483_v29 = vld [vmem:[%s1578_s19 + $0x20] sm:$0xff]   ;;  %v352_v31 = vld [vmem:[%s1732_s3 + $0x38] sm:$0xff] }
  0x15   : > { %1421 = vmatpush3.bf16.msra.mxu1 %v1462_v3  ;;  %1388 = vmatprep.subr.bf16.mxu0 %v1465_v7  ;;  %v349_v30 = vld [vmem:[%s1732_s3 + $0x20] sm:$0xff]  ;;  %v1482_v32 = vld [vmem:[%s1731_s2 + $0x18] sm:$0xff]   ;;  %v351_v33 = vld [vmem:[%s1732_s3 + $0x30] sm:$0xff] }
  0x16   : > { %1422 = vmatprep.subr.bf16.mxu1 %v1464_v6  ;;  %v1485_v34 = vld [vmem:[%s1731_s2 + $0x20] sm:$0xff]   ;;  %v1484_v35 = vld [vmem:[%s1578_s19 + $0x28] sm:$0xff]   ;;  %v1487_v37 = vld [vmem:[%s1578_s19 + $0x30] sm:$0xff]  }
  0x17   : > { %388 = vperm.xlu1 %1458, %v350_v28   ;;  %v354_v36 = vld [vmem:[%s1732_s3 + $0x48] sm:$0xff]  ;;  %v353_v38 = vld [vmem:[%s1732_s3 + $0x40] sm:$0xff]  ;;  %v356_v39 = vld [vmem:[%s1732_s3 + $0x58] sm:$0xff] }
  0x18   : > { %1389 = vmatpush3.bf16.msra.mxu0 %v1465_v7  ;;  %368 = vperm.xlu0 %1457, %v346_v25   ;;  %v1486_v40 = vld [vmem:[%s1731_s2 + $0x28] sm:$0xff]   ;;  %v355_v41 = vld [vmem:[%s1732_s3 + $0x50] sm:$0xff]  ;;  %v1488_v43 = vld [vmem:[%s1578_s19 + $0x38] sm:$0xff]  }
  0x19   : > { %1423 = vmatpush3.bf16.msra.mxu1 %v1464_v6  ;;  %1390 = vmatprep.subr.bf16.mxu0 %v1467_v9  ;;  %v1489_v42 = vld [vmem:[%s1731_s2 + $0x30] sm:$0xff]   ;;  %v358_v44 = vld [vmem:[%s1732_s3 + $0x68] sm:$0xff]  ;;  %v357_v45 = vld [vmem:[%s1732_s3 + $0x60] sm:$0xff] }
  0x1a   : > { %1424 = vmatprep.subr.bf16.mxu1 %v1466_v8  ;;  %v360_v46 = vld [vmem:[%s1732_s3 + $0x78] sm:$0xff]  ;;  %v359_v48 = vld [vmem:[%s1732_s3 + $0x70] sm:$0xff]  ;;  %v1677_v53 = vld [vmem:[%s1734_s5] ss:$0 sm:$0xff] }
  0x1b   : > { %398 = vperm.xlu1 %1458, %v352_v31   ;;  %v1490_v47 = vld [vmem:[%s1731_s2 + $0x38] sm:$0xff]  }
  0x1c   : > { %1391 = vmatpush3.bf16.msra.mxu0 %v1467_v9  ;;  %383 = vperm.xlu0 %1457, %v349_v30  }
  0x1d   : > { %1425 = vmatpush3.bf16.msra.mxu1 %v1466_v8  ;;  %1392 = vmatprep.subr.bf16.mxu0 %v1469_v12 }
  0x1e   : > { %1426 = vmatprep.subr.bf16.mxu1 %v1468_v11 }
  0x1f   : > { %408 = vperm.xlu1 %1458, %v354_v36  }
  0x20   : > { %1393 = vmatpush3.bf16.msra.mxu0 %v1469_v12  ;;  %393 = vperm.xlu0 %1457, %v351_v33  }
  0x21   : > { %1427 = vmatpush3.bf16.msra.mxu1 %v1468_v11  ;;  %1394 = vmatprep.subr.bf16.mxu0 %v1471_v15 }
  0x22   : > { %1428 = vmatprep.subr.bf16.mxu1 %v1470_v14 }
  0x23   : > { %418 = vperm.xlu1 %1458, %v356_v39  }
  0x24   : > { %1395 = vmatpush3.bf16.msra.mxu0 %v1471_v15  ;;  %403 = vperm.xlu0 %1457, %v353_v38  }
  0x25   : > { %1429 = vmatpush3.bf16.msra.mxu1 %v1470_v14  ;;  %1396 = vmatprep.subr.bf16.mxu0 %v1473_v17 }
  0x26   : > { %1430 = vmatprep.subr.bf16.mxu1 %v1472_v16 }
  0x27   : > { %428 = vperm.xlu1 %1458, %v358_v44  }
  0x28   : > { %1397 = vmatpush3.bf16.msra.mxu0 %v1473_v17  ;;  %413 = vperm.xlu0 %1457, %v355_v41  }
  0x29   : > { %1431 = vmatpush3.bf16.msra.mxu1 %v1472_v16  ;;  %1398 = vmatprep.subr.bf16.mxu0 %v1476_v19 }
  0x2b   : > { %438 = vperm.xlu1 %1458, %v360_v46  }
  0x2c   : > { %1433 = vmatmul.mubr.bf16.vlgmr.msra.gmra.mxu1 %v1475_v18  ;;  %1399 = vmatpush3.bf16.msra.mxu0 %v1476_v19 }
  0x2d   : > { %1436 = vmatprep.mubr.bf16.mxu1 %v1479_v20  ;;  %423 = vperm.xlu0 %1457, %v357_v45  }
  0x2f   : > { %1401 = vmatmul.mubr.bf16.vlgmr.msra.gmra.mxu0 %v1478_v24 }
  0x30   : > { %1404 = vmatprep.mubr.bf16.mxu0 %v1481_v26 }
  0x31   : > { %433 = vperm.xlu0 %1457, %v359_v48  }
  0x34   : > { %1437 = vmatmul.mubr.bf16.gmra.mxu1 %v1480_v27 }
  0x35   : > { %1440 = vmatprep.mubr.bf16.mxu1 %v1483_v29 }
  0x37   : > { %1405 = vmatmul.mubr.bf16.gmra.mxu0 %v1482_v32 }
  0x38   : > { %1408 = vmatprep.mubr.bf16.mxu0 %v1485_v34 }
  0x3c   : > { %1441 = vmatmul.mubr.bf16.gmra.mxu1 %v1484_v35 }
  0x3d   : > { %1444 = vmatprep.mubr.bf16.mxu1 %v1487_v37 }
  0x3f   : > { %1409 = vmatmul.mubr.bf16.gmra.mxu0 %v1486_v40 }
  0x40   : > { %1412 = vmatprep.mubr.bf16.mxu0 %v1489_v42 }
  0x44   : > { %1445 = vmatmul.mubr.bf16.gmra.mxu1 %v1488_v43 }
  0x47   : > { %1413 = vmatmul.mubr.bf16.gmra.mxu0 %v1490_v47 }
  0x8a   : > { %v374_v49 = vpop.permute.xlu1 %373 }
  0x8e   : > { %v379_v51 = vpop.permute.xlu1 %378 }
  0x8f   : > { %v364_v50 = vpop.permute.xlu0 %363 }
  0x92   : > { %v1680_v57 = vpop.permute.xlu1 %388 }
  0x93   : > { %v369_v52 = vpop.permute.xlu0 %368 }
  0x96   : > { %v399_v5 = vpop.permute.xlu1 %398 }
  0x97   : > { %v384_v58 = vpop.permute.xlu0 %383 }
  0x9a   : > { %v409_v26 = vpop.permute.xlu1 %408 }
  0x9b   : > { %v394_v6 = vpop.permute.xlu0 %393 }
  0x9e   : > { %v419_v46 = vpop.permute.xlu1 %418 }
  0x9f   : > { %v404_v27 = vpop.permute.xlu0 %403 }
  0xa3   : > { %v414_v47 = vpop.permute.xlu0 %413 }
  0xec   : > { %v1434_v54 = vpop.f32.mrf.mxu1 }
  0xed   : > { %v812_v55 = vadd.f32 %v1434_v54, %v1677_v53 }
  0xee   : > { %v803_v56 = vpop.f32.mrf.mxu1 }
  0xef   : > { %v868_v60 = vmax.f32 %v812_v55, 0.0  ;;  %v804_v61 = vadd.f32 %v1677_v53, %v803_v56  ;;  %v1402_v63 = vpop.f32.mrf.mxu0 }
  0xf0   : > { %v1435_v59 = vpop.f32.mrf.mxu1  ;;  %v580_v13 = vadd.f32 %v1402_v63, %v374_v49 }
  0xf1   : > { %v815_v62 = vadd.f32 %v1435_v59, %v1677_v53  ;;  %v571_v3 = vpop.f32.mrf.mxu0  ;;  %v866_v7 = vmax.f32 %v804_v61, 0.0 }
  0xf2   : > { %v806_v0 = vpop.f32.mrf.mxu1  ;;  %v572_v16 = vadd.f32 %v571_v3, %v364_v50  ;;  %v424_v3 = vpop.permute.xlu0 %423 }
  0xf3   : > { %v869_v1 = vmax.f32 %v815_v62, 0.0  ;;  %v807_v2 = vadd.f32 %v1677_v53, %v806_v0  ;;  %v1403_v11 = vpop.f32.mrf.mxu0 }
  0xf4   : > { %v1438_v4 = vpop.f32.mrf.mxu1  ;;  %v583_v15 = vadd.f32 %v1403_v11, %v379_v51 }
  0xf5   : > { %v1306_v8 = vpack.c.bf16 %v869_v1, %v868_v60  ;;  %v867_v9 = vmax.f32 %v807_v2, 0.0  ;;  %v828_v10 = vadd.f32 %v1438_v4, %v1677_v53  ;;  %v574_v18 = vpop.f32.mrf.mxu0  ;;  %v429_v2 = vpop.permute.xlu1 %428 }
  0xf6   : > { %v819_v12 = vpop.f32.mrf.mxu1  ;;  %v1266_v20 = vpack.c.bf16 %v583_v15, %v580_v13  ;;  %v575_v22 = vadd.f32 %v574_v18, %v369_v52 }
  0xf7   : > { %1345 = vst [vmem:[%s1689_s16 + $0x8] sm:$0xff] %v1306_v8   ;;  %v1301_v14 = vpack.c.bf16 %v867_v9, %v866_v7  ;;  %v872_v17 = vmax.f32 %v828_v10, 0.0  ;;  %v820_v21 = vadd.f32 %v1677_v53, %v819_v12  ;;  %v1406_v24 = vpop.f32.mrf.mxu0 }
  0xf8   : > { %v1439_v19 = vpop.f32.mrf.mxu1  ;;  %1338 = vst [vmem:[%s1697_s20 + $0x8] sm:$0xff] %v1266_v20   ;;  %v1261_v28 = vpack.c.bf16 %v575_v22, %v572_v16  ;;  %v596_v39 = vadd.f32 %v1406_v24, %v394_v6 }
  0xf9   : > { %1302 = vst [vmem:[%s1689_s16] sm:$0xff] %v1301_v14   ;;  %v831_v23 = vadd.f32 %v1439_v19, %v1677_v53  ;;  %v587_v31 = vpop.f32.mrf.mxu0  ;;  %v870_v33 = vmax.f32 %v820_v21, 0.0  ;;  %v439_v21 = vpop.permute.xlu1 %438 }
  0xfa   : > { %v822_v25 = vpop.f32.mrf.mxu1  ;;  %1262 = vst [vmem:[%s1697_s20] sm:$0xff] %v1261_v28   ;;  %v588_v42 = vadd.f32 %v587_v31, %v384_v58 }
  0xfb   : > { %v873_v29 = vmax.f32 %v831_v23, 0.0  ;;  %v823_v30 = vadd.f32 %v1677_v53, %v822_v25  ;;  %v1407_v37 = vpop.f32.mrf.mxu0  ;;  %v434_v25 = vpop.permute.xlu0 %433 }
  0xfc   : > { %v1442_v32 = vpop.f32.mrf.mxu1  ;;  %v599_v41 = vadd.f32 %v1407_v37, %v399_v5 }
  0xfd   : > { %v1316_v34 = vpack.c.bf16 %v873_v29, %v872_v17  ;;  %v871_v35 = vmax.f32 %v823_v30, 0.0  ;;  %v844_v36 = vadd.f32 %v1442_v32, %v1677_v53  ;;  %v590_v44 = vpop.f32.mrf.mxu0 }
  0xfe   : > { %v835_v38 = vpop.f32.mrf.mxu1  ;;  %v1276_v48 = vpack.c.bf16 %v599_v41, %v596_v39  ;;  %v591_v50 = vadd.f32 %v590_v44, %v1680_v57 }
  0xff   : > { %1347 = vst [vmem:[%s1689_s16 + $0x18] sm:$0xff] %v1316_v34   ;;  %v1311_v40 = vpack.c.bf16 %v871_v35, %v870_v33  ;;  %v876_v43 = vmax.f32 %v844_v36, 0.0  ;;  %v836_v49 = vadd.f32 %v1677_v53, %v835_v38  ;;  %v1410_v52 = vpop.f32.mrf.mxu0 }
 0x100   : > { %v1443_v45 = vpop.f32.mrf.mxu1  ;;  %1340 = vst [vmem:[%s1697_s20 + $0x18] sm:$0xff] %v1276_v48   ;;  %v1271_v55 = vpack.c.bf16 %v591_v50, %v588_v42  ;;  %v612_v4 = vadd.f32 %v1410_v52, %v414_v47 }
 0x101   : > { %1346 = vst [vmem:[%s1689_s16 + $0x10] sm:$0xff] %v1311_v40   ;;  %v847_v51 = vadd.f32 %v1443_v45, %v1677_v53  ;;  %v603_v59 = vpop.f32.mrf.mxu0  ;;  %v874_v61 = vmax.f32 %v836_v49, 0.0 }
 0x102   : > { %v838_v54 = vpop.f32.mrf.mxu1  ;;  %1339 = vst [vmem:[%s1697_s20 + $0x10] sm:$0xff] %v1271_v55   ;;  %v604_v7 = vadd.f32 %v603_v59, %v404_v27 }
 0x103   : > { %v877_v56 = vmax.f32 %v847_v51, 0.0  ;;  %v839_v58 = vadd.f32 %v1677_v53, %v838_v54  ;;  %v1411_v57 = vpop.f32.mrf.mxu0 }
 0x104   : > { %v1446_v60 = vpop.f32.mrf.mxu1  ;;  %v615_v6 = vadd.f32 %v1411_v57, %v419_v46 }
 0x105   : > { %v1326_v62 = vpack.c.bf16 %v877_v56, %v876_v43  ;;  %v875_v63 = vmax.f32 %v839_v58, 0.0  ;;  %v860_v0 = vadd.f32 %v1446_v60, %v1677_v53  ;;  %v606_v9 = vpop.f32.mrf.mxu0 }
 0x106   : > { %v851_v1 = vpop.f32.mrf.mxu1  ;;  %v1286_v11 = vpack.c.bf16 %v615_v6, %v612_v4  ;;  %v607_v13 = vadd.f32 %v606_v9, %v409_v26 }
 0x107   : > { %1349 = vst [vmem:[%s1689_s16 + $0x28] sm:$0xff] %v1326_v62   ;;  %v1321_v5 = vpack.c.bf16 %v875_v63, %v874_v61  ;;  %v880_v8 = vmax.f32 %v860_v0, 0.0  ;;  %v852_v12 = vadd.f32 %v1677_v53, %v851_v1  ;;  %v1414_v15 = vpop.f32.mrf.mxu0 }
 0x108   : > { %v1447_v10 = vpop.f32.mrf.mxu1  ;;  %1342 = vst [vmem:[%s1697_s20 + $0x28] sm:$0xff] %v1286_v11   ;;  %v1281_v17 = vpack.c.bf16 %v607_v13, %v604_v7  ;;  %v628_v27 = vadd.f32 %v1414_v15, %v434_v25 }
 0x109   : > { %1348 = vst [vmem:[%s1689_s16 + $0x20] sm:$0xff] %v1321_v5   ;;  %v863_v14 = vadd.f32 %v1447_v10, %v1677_v53  ;;  %v619_v20 = vpop.f32.mrf.mxu0  ;;  %v878_v22 = vmax.f32 %v852_v12, 0.0 }
 0x10a   : > { %v854_v16 = vpop.f32.mrf.mxu1  ;;  %1341 = vst [vmem:[%s1697_s20 + $0x20] sm:$0xff] %v1281_v17   ;;  %v620_v31 = vadd.f32 %v619_v20, %v424_v3 }
 0x10b   : > { %v881_v18 = vmax.f32 %v863_v14, 0.0  ;;  %v855_v19 = vadd.f32 %v1677_v53, %v854_v16  ;;  %v1415_v26 = vpop.f32.mrf.mxu0 }
 0x10c   : > { %v631_v29 = vadd.f32 %v1415_v26, %v439_v21 }
 0x10d   : > { %v1336_v23 = vpack.c.bf16 %v881_v18, %v880_v8  ;;  %v879_v24 = vmax.f32 %v855_v19, 0.0  ;;  %v622_v30 = vpop.f32.mrf.mxu0 }
 0x10e   : > { %v1296_v32 = vpack.c.bf16 %v631_v29, %v628_v27  ;;  %v623_v33 = vadd.f32 %v622_v30, %v429_v2 }
 0x10f   : > { %1351 = vst [vmem:[%s1689_s16 + $0x38] sm:$0xff] %v1336_v23   ;;  %v1331_v28 = vpack.c.bf16 %v879_v24, %v878_v22 }
 0x110   : > { %1344 = vst [vmem:[%s1697_s20 + $0x38] sm:$0xff] %v1296_v32   ;;  %v1291_v53 = vpack.c.bf16 %v623_v33, %v620_v31 }
 0x111   : > { %1350 = vst [vmem:[%s1689_s16 + $0x30] sm:$0xff] %v1331_v28  }
 0x112   : > { %1343 = vst [vmem:[%s1697_s20 + $0x30] sm:$0xff] %v1291_v53  }
 0x113 PF: > { %s18_s24 = sadd.s32 1, %s1497_s24  }
 0x114   : > { %p15_p4 = scmp.ge.s32.totalorder %s18_s24, 4  }
 0x116   :  { %17 = sbr.rel (!%p15_p4) target bundleno = 1 (0x1), region = 89 }

</bundles_post_ra>
